<compile_context>
chip_gen: v5e
topology: v5e:2x2
jax: 0.10.0
libtpu: 0.0.40
codegen_flags: <defaults>
</compile_context>

<pallas_src>
import numpy as np
import jax
import jax.numpy as jnp
from jax import lax
from jax.experimental import pallas as pl
from jax.experimental.pallas import tpu as pltpu

COMPUTE_DTYPE = jnp.bfloat16   # MXU operand dtype for conv2/pool/fc (f32 accumulate)

# LeNet-5 static dimensions (28x28 input is implied by fc1 = Linear(16*4*4, 120)).
H_IN = 28            # input spatial size, 1 channel
C1, C2 = 6, 16       # conv output channels
K = 5                # conv kernel size
H1 = H_IN - K + 1    # 24 : conv1 output spatial
P1 = H1 // 2         # 12 : pool1 output spatial
H2 = P1 - K + 1      # 8  : conv2 output spatial
P2 = H2 // 2         # 4  : pool2 output spatial
FCP = 128            # padded lane width for conv2/fc tiles (>= 120, 84, 10, 8*16)
MAX_BLOCK_BATCH = 8  # images per grid step (static unroll inside the kernel)


# ----------------------------- Pallas kernel --------------------------------


def _lenet5_kernel(x_ref, w1_ref, b1_ref, prow1_ref, pcol1_ref,
                   w2_ref, b2_ref, prow2_ref,
                   wf1_ref, bf1_ref, wf2_ref, bf2_ref, wf3_ref, bf3_ref,
                   out_ref, q2_ref):
    f32 = jnp.float32
    cd = wf2_ref.dtype                       # compute dtype (bf16 or f32)
    bb = x_ref.shape[0]                      # images in this grid step (<= 8)

    # Hoisted once per grid step (outside the per-image unroll): weight loads
    # and bias broadcasts (JAX does not CSE broadcast_in_dim per iteration).
    w1 = w1_ref[...]                         # (140, 144) f32
    prow1 = prow1_ref[...]                   # (12, 24)   cd
    pcol1 = pcol1_ref[...]                   # (144, 72)  cd
    prow2 = prow2_ref[...]                   # (4, 8)     cd
    w2 = [w2_ref[ki] for ki in range(K)]     # 5 x (72, 128) cd
    b1 = jnp.broadcast_to(b1_ref[...], (H1, H1 * C1))   # (24, 144) f32
    b2 = jnp.broadcast_to(b2_ref[...], (H2, H2 * C2))   # (8, 128)  f32

    for b in range(bb):                      # static per-image unroll (bb <= 8)
        # conv1: ONE GEMM, contract 5*28 = 140 (lhs pre-shifted on the host),
        # kept f32 for accuracy -- it is the input layer and negligible work.
        o1 = jnp.dot(x_ref[b], w1, preferred_element_type=f32)          # (24, 144)
        o1 = jnp.maximum(o1 + b1, 0.0).astype(cd)

        # pool1 (2x2 avg, stride 2) as two bf16 constant matmuls.
        t1 = jnp.dot(prow1, o1, preferred_element_type=f32).astype(cd)  # (12, 144)
        p1 = jnp.dot(t1, pcol1, preferred_element_type=f32)             # (12, 72) f32

        # conv2 (5x5, 6->16): K row-shifted GEMMs accumulated; the first dot
        # initializes the accumulator (no zeros + add).
        o2 = jnp.dot(p1[0:H2, :].astype(cd), w2[0], preferred_element_type=f32)
        for ki in range(1, K):
            o2 = o2 + jnp.dot(p1[ki:ki + H2, :].astype(cd), w2[ki],
                              preferred_element_type=f32)
        o2 = jnp.maximum(o2 + b2, 0.0).astype(cd)                       # (8, 128)

        # pool2: row average only (column average is folded into the fc1
        # weights).  Stage into VMEM so the fc tail runs batched over all bb
        # images; rows are laid out r*bb + b so each fc1 lhs is a contiguous
        # (bb, 128) slab.
        q2 = jnp.dot(prow2, o2, preferred_element_type=f32)             # (4, 128) f32
        for r in range(P2):
            q2_ref[pl.ds(r * bb + b, 1), :] = q2[r:r + 1, :]

    # ---- Batched FC tail: M = bb rows per dot instead of bb M=1 dots. ----
    h = jnp.dot(q2_ref[0:bb, :].astype(cd), wf1_ref[0],
                preferred_element_type=f32)
    for r in range(1, P2):
        h = h + jnp.dot(q2_ref[r * bb:(r + 1) * bb, :].astype(cd), wf1_ref[r],
                        preferred_element_type=f32)
    h = jnp.maximum(h + bf1_ref[...], 0.0).astype(cd)                   # (bb, 128)

    h = jnp.dot(h, wf2_ref[...], preferred_element_type=f32) + bf2_ref[...]
    h = jnp.maximum(h, 0.0).astype(cd)

    # Single dense (bb, 128) store (lane-dense output slab).
    out_ref[...] = jnp.dot(h, wf3_ref[...],
                           preferred_element_type=f32) + bf3_ref[...]


# -------------------------- host-side packing -------------------------------


def pack_params(params, compute_dtype=COMPUTE_DTYPE):
    """One-time (model-load) repack of PyTorch-layout LeNet-5 parameters into
    the kernel's scattered-weight constant matrices (numpy, runs on host)."""
    w1 = np.asarray(params["w_conv1"], np.float32)    # (6, 1, 5, 5)
    b1 = np.asarray(params["b_conv1"], np.float32)
    w2 = np.asarray(params["w_conv2"], np.float32)    # (16, 6, 5, 5)
    b2 = np.asarray(params["b_conv2"], np.float32)
    fw1 = np.asarray(params["w_fc1"], np.float32)     # (120, 256)
    fb1 = np.asarray(params["b_fc1"], np.float32)
    fw2 = np.asarray(params["w_fc2"], np.float32)     # (84, 120)
    fb2 = np.asarray(params["b_fc2"], np.float32)
    fw3 = np.asarray(params["w_fc3"], np.float32)     # (10, 84)
    fb3 = np.asarray(params["b_fc3"], np.float32)

    # conv1 fused weight: lhs column ki*28 + r holds x[i+ki, r]; output column
    # j*6 + co; nonzero where r = j + kj.  (Same scatter as before, reshaped
    # to (140, 144) because the kernel now does one GEMM.)
    W1 = np.zeros((K, H_IN, H1 * C1), np.float32)
    for ki in range(K):
        for kj in range(K):
            for j in range(H1):
                W1[ki, j + kj, j * C1:(j + 1) * C1] = w1[:, 0, ki, kj]
    W1 = W1.reshape(K * H_IN, H1 * C1)                # (140, 144)
    b1r = np.tile(b1, H1)[None, :]                    # (1, 144)

    # 2x2 average pooling as 0.5-valued matmuls (rows, then (w,c) columns).
    def pool_mats(h_in, c):
        h_out = h_in // 2
        prow = np.zeros((h_out, h_in), np.float32)
        pcol = np.zeros((h_in * c, h_out * c), np.float32)
        for p in range(h_out):
            prow[p, 2 * p] = prow[p, 2 * p + 1] = 0.5
            for ch in range(c):
                pcol[(2 * p) * c + ch, p * c + ch] = 0.5
                pcol[(2 * p + 1) * c + ch, p * c + ch] = 0.5
        return prow, pcol

    prow1, pcol1 = pool_mats(H1, C1)                  # (12,24), (144,72)
    prow2, pcol2 = pool_mats(H2, C2)                  # (4,8),   (128,64)

    # conv2: 5 row-shift matrices (12*6 = 72, 8*16 = 128).  Input column
    # (j+kj)*6 + ci maps to output column j*16 + co.
    W2 = np.zeros((K, P1 * C1, H2 * C2), np.float32)
    for ki in range(K):
        for kj in range(K):
            for j in range(H2):
                for ci in range(C1):
                    W2[ki, (j + kj) * C1 + ci, j * C2:(j + 1) * C2] = w2[:, ci, ki, kj]
    b2r = np.tile(b2, H2)[None, :]                    # (1, 128)

    # fc1: one matrix per pooled spatial row h, mapping the (w, c)-interleaved
    # columns to PyTorch's flatten order c*16 + h*4 + w ...
    n_fc1 = fw1.shape[0]                              # 120
    WF1 = np.zeros((P2, P2 * C2, FCP), np.float32)
    for h in range(P2):
        for w in range(P2):
            for c in range(C2):
                WF1[h, w * C2 + c, :n_fc1] = fw1[:, c * P2 * P2 + h * P2 + w]
    # ... with pool2's column-average folded in: WF1'[r] = pcol2 @ WF1[r].
    WF1 = np.einsum("kc,rcn->rkn", pcol2, WF1)        # (4, 128, 128)
    bfc1 = np.zeros((1, FCP), np.float32)
    bfc1[0, :n_fc1] = fb1

    n_fc2 = fw2.shape[0]                              # 84
    WF2 = np.zeros((FCP, FCP), np.float32)
    WF2[:n_fc1, :n_fc2] = fw2.T
    bfc2 = np.zeros((1, FCP), np.float32)
    bfc2[0, :n_fc2] = fb2

    n_fc3 = fw3.shape[0]                              # 10
    WF3 = np.zeros((FCP, FCP), np.float32)
    WF3[:n_fc2, :n_fc3] = fw3.T
    bfc3 = np.zeros((1, FCP), np.float32)
    bfc3[0, :n_fc3] = fb3

    cd, f32 = compute_dtype, jnp.float32
    return {
        "w1": jnp.asarray(W1, f32), "b1": jnp.asarray(b1r, f32),   # conv1 stays f32
        "prow1": jnp.asarray(prow1, cd), "pcol1": jnp.asarray(pcol1, cd),
        "w2": jnp.asarray(W2, cd), "b2": jnp.asarray(b2r, f32),
        "prow2": jnp.asarray(prow2, cd),
        "wf1": jnp.asarray(WF1, cd), "bf1": jnp.asarray(bfc1, f32),
        "wf2": jnp.asarray(WF2, cd), "bf2": jnp.asarray(bfc2, f32),
        "wf3": jnp.asarray(WF3, cd), "bf3": jnp.asarray(bfc3, f32),
    }


# ------------------------------- wrapper -------------------------------------


def lenet5_forward(packed, x, block_batch=MAX_BLOCK_BATCH):
    """x: (B, 1, 28, 28) NCHW float32.  Returns (B, 10) logits."""
    B = x.shape[0]
    x3 = x.reshape(B, H_IN, H_IN).astype(jnp.float32)
    # Host-side K=5 row-shift "im2col" (review: ship x pre-shifted): (B, 24, 140)
    # so conv1 is a single 140-deep GEMM inside the kernel.
    x_sh = jnp.concatenate([x3[:, ki:ki + H1, :] for ki in range(K)], axis=2)

    bb = min(block_batch, B)                 # images per grid step
    bp = ((B + bb - 1) // bb) * bb           # batch padded to a multiple of bb
    if bp != B:
        x_sh = jnp.pad(x_sh, ((0, bp - B), (0, 0), (0, 0)))

    def resident(arr):   # full-array block, constant index -> stays VMEM-resident
        n = arr.ndim
        return pl.BlockSpec(arr.shape, lambda i, n=n: (0,) * n)

    w_names = ("w1", "b1", "prow1", "pcol1", "w2", "b2", "prow2",
               "wf1", "bf1", "wf2", "bf2", "wf3", "bf3")
    weights = [packed[k] for k in w_names]

    out = pl.pallas_call(
        _lenet5_kernel,
        out_shape=jax.ShapeDtypeStruct((bp, FCP), jnp.float32),
        grid=(bp // bb,),
        in_specs=[pl.BlockSpec((bb, H1, K * H_IN), lambda i: (i, 0, 0))]
                 + [resident(w) for w in weights],
        out_specs=pl.BlockSpec((bb, FCP), lambda i: (i, 0)),
        scratch_shapes=[pltpu.VMEM((P2 * bb, FCP), jnp.float32)],
        compiler_params=pltpu.CompilerParams(
            dimension_semantics=("parallel",)),   # v7x: shard batch over 2 TCs
    )(x_sh, *weights)
    return out[:B, :10]


# ------------------------------ validation ----------------------------------


def init_params(key):
    def u(k, shape, fan_in):
        bound = 1.0 / np.sqrt(fan_in)
        return jax.random.uniform(k, shape, jnp.float32, -bound, bound)

    ks = jax.random.split(key, 10)
    return {
        "w_conv1": u(ks[0], (6, 1, 5, 5), 1 * 5 * 5),
        "b_conv1": u(ks[1], (6,), 1 * 5 * 5),
        "w_conv2": u(ks[2], (16, 6, 5, 5), 6 * 5 * 5),
        "b_conv2": u(ks[3], (16,), 6 * 5 * 5),
        "w_fc1":   u(ks[4], (120, 16 * 4 * 4), 16 * 4 * 4),
        "b_fc1":   u(ks[5], (120,), 16 * 4 * 4),
        "w_fc2":   u(ks[6], (84, 120), 120),
        "b_fc2":   u(ks[7], (84,), 120),
        "w_fc3":   u(ks[8], (10, 84), 84),
        "b_fc3":   u(ks[9], (10,), 84),
    }


def lenet5_reference(params, x):
    """Pure-JAX f32 reference mirroring the PyTorch forward."""
    def conv(x, w, b):
        y = lax.conv_general_dilated(x, w, (1, 1), "VALID",
                                     dimension_numbers=("NCHW", "OIHW", "NCHW"))
        return jax.nn.relu(y + b[None, :, None, None])

    def pool(x):
        B, C, H, W = x.shape
        return x.reshape(B, C, H // 2, 2, W // 2, 2).mean(axis=(3, 5))

    x = pool(conv(x, params["w_conv1"], params["b_conv1"]))
    x = pool(conv(x, params["w_conv2"], params["b_conv2"]))
    x = x.reshape(x.shape[0], -1)
    x = jax.nn.relu(x @ params["w_fc1"].T + params["b_fc1"])
    x = jax.nn.relu(x @ params["w_fc2"].T + params["b_fc2"])
    return x @ params["w_fc3"].T + params["b_fc3"]


if __name__ == "__main__":
    key = jax.random.PRNGKey(0)
    pkey, xkey = jax.random.split(key)
    params = init_params(pkey)

    # fc1 = Linear(16*4*4, 120) implies 28x28 inputs: 28 -> 24 -> 12 -> 8 -> 4.
    x = jax.random.normal(xkey, (2, 1, 28, 28), jnp.float32)

    packed = pack_params(params)
    fwd = jax.jit(lenet5_forward)
    out = jax.block_until_ready(fwd(packed, x))
    assert out.shape == (2, 10)

    ref = lenet5_reference(params, x)
    # bf16 MXU operands (f32 accumulation, f32 conv1) -> ~1e-3 abs error at
    # LeNet scale; COMPUTE_DTYPE = float32 matches the reference at 1e-5.
    if COMPUTE_DTYPE == jnp.bfloat16:
        rtol, atol = 2e-2, 2e-2
    else:
        rtol, atol = 1e-5, 1e-5
    if not jnp.allclose(out, ref, rtol=rtol, atol=atol):
        raise AssertionError("Pallas LeNet5 output mismatches pure-JAX reference")

    print("KERNEL_OK")
</pallas_src>

<mosaic_0001>
module attributes {stable_mosaic.version = 11 : i64} {
  func.func @_lenet5_kernel(%arg0: i32, %arg1: memref<2x24x140xf32, #tpu.memory_space<vmem>>, %arg2: memref<140x144xf32, #tpu.memory_space<vmem>>, %arg3: memref<1x144xf32, #tpu.memory_space<vmem>>, %arg4: memref<12x24xbf16, #tpu.memory_space<vmem>>, %arg5: memref<144x72xbf16, #tpu.memory_space<vmem>>, %arg6: memref<5x72x128xbf16, #tpu.memory_space<vmem>>, %arg7: memref<1x128xf32, #tpu.memory_space<vmem>>, %arg8: memref<4x8xbf16, #tpu.memory_space<vmem>>, %arg9: memref<4x128x128xbf16, #tpu.memory_space<vmem>>, %arg10: memref<1x128xf32, #tpu.memory_space<vmem>>, %arg11: memref<128x128xbf16, #tpu.memory_space<vmem>>, %arg12: memref<1x128xf32, #tpu.memory_space<vmem>>, %arg13: memref<128x128xbf16, #tpu.memory_space<vmem>>, %arg14: memref<1x128xf32, #tpu.memory_space<vmem>>, %arg15: memref<2x128xf32, #tpu.memory_space<vmem>>, %arg16: memref<8x128xf32, #tpu.memory_space<vmem>>) attributes {dimension_semantics = [#tpu.dimension_semantics<parallel>], iteration_bounds = array<i64: 1>, scalar_prefetch = 0 : i64, scratch_operands = 1 : i64, tpu.core_type = #tpu.core_type<tc>, window_params = [{transform_indices = @transform_0, window_bounds = array<i64: 2, 24, 140>}, {pipeline_mode = #tpu.pipeline_mode<synchronous>, transform_indices = @transform_1, window_bounds = array<i64: 140, 144>}, {pipeline_mode = #tpu.pipeline_mode<synchronous>, transform_indices = @transform_2, window_bounds = array<i64: 1, 144>}, {pipeline_mode = #tpu.pipeline_mode<synchronous>, transform_indices = @transform_3, window_bounds = array<i64: 12, 24>}, {pipeline_mode = #tpu.pipeline_mode<synchronous>, transform_indices = @transform_4, window_bounds = array<i64: 144, 72>}, {pipeline_mode = #tpu.pipeline_mode<synchronous>, transform_indices = @transform_5, window_bounds = array<i64: 5, 72, 128>}, {pipeline_mode = #tpu.pipeline_mode<synchronous>, transform_indices = @transform_6, window_bounds = array<i64: 1, 128>}, {pipeline_mode = #tpu.pipeline_mode<synchronous>, transform_indices = @transform_7, window_bounds = array<i64: 4, 8>}, {pipeline_mode = #tpu.pipeline_mode<synchronous>, transform_indices = @transform_8, window_bounds = array<i64: 4, 128, 128>}, {pipeline_mode = #tpu.pipeline_mode<synchronous>, transform_indices = @transform_9, window_bounds = array<i64: 1, 128>}, {pipeline_mode = #tpu.pipeline_mode<synchronous>, transform_indices = @transform_10, window_bounds = array<i64: 128, 128>}, {pipeline_mode = #tpu.pipeline_mode<synchronous>, transform_indices = @transform_11, window_bounds = array<i64: 1, 128>}, {pipeline_mode = #tpu.pipeline_mode<synchronous>, transform_indices = @transform_12, window_bounds = array<i64: 128, 128>}, {pipeline_mode = #tpu.pipeline_mode<synchronous>, transform_indices = @transform_13, window_bounds = array<i64: 1, 128>}, {transform_indices = @transform_14, window_bounds = array<i64: 2, 128>}]} {
    %c0 = arith.constant 0 : index
    %c0_0 = arith.constant 0 : index
    %0 = vector.load %arg2[%c0, %c0_0] : memref<140x144xf32, #tpu.memory_space<vmem>>, vector<140x144xf32>
    %c0_1 = arith.constant 0 : index
    %c0_2 = arith.constant 0 : index
    %1 = vector.load %arg4[%c0_1, %c0_2] : memref<12x24xbf16, #tpu.memory_space<vmem>>, vector<12x24xbf16>
    %c0_3 = arith.constant 0 : index
    %c0_4 = arith.constant 0 : index
    %2 = vector.load %arg5[%c0_3, %c0_4] : memref<144x72xbf16, #tpu.memory_space<vmem>>, vector<144x72xbf16>
    %c0_5 = arith.constant 0 : index
    %c0_6 = arith.constant 0 : index
    %3 = vector.load %arg8[%c0_5, %c0_6] : memref<4x8xbf16, #tpu.memory_space<vmem>>, vector<4x8xbf16>
    %c0_7 = arith.constant 0 : index
    %c0_8 = arith.constant 0 : index
    %c0_9 = arith.constant 0 : index
    %4 = vector.load %arg6[%c0_7, %c0_8, %c0_9] : memref<5x72x128xbf16, #tpu.memory_space<vmem>>, vector<1x72x128xbf16>
    %5 = vector.shape_cast %4 : vector<1x72x128xbf16> to vector<72x128xbf16>
    %c1 = arith.constant 1 : index
    %c0_10 = arith.constant 0 : index
    %c0_11 = arith.constant 0 : index
    %6 = vector.load %arg6[%c1, %c0_10, %c0_11] : memref<5x72x128xbf16, #tpu.memory_space<vmem>>, vector<1x72x128xbf16>
    %7 = vector.shape_cast %6 : vector<1x72x128xbf16> to vector<72x128xbf16>
    %c2 = arith.constant 2 : index
    %c0_12 = arith.constant 0 : index
    %c0_13 = arith.constant 0 : index
    %8 = vector.load %arg6[%c2, %c0_12, %c0_13] : memref<5x72x128xbf16, #tpu.memory_space<vmem>>, vector<1x72x128xbf16>
    %9 = vector.shape_cast %8 : vector<1x72x128xbf16> to vector<72x128xbf16>
    %c3 = arith.constant 3 : index
    %c0_14 = arith.constant 0 : index
    %c0_15 = arith.constant 0 : index
    %10 = vector.load %arg6[%c3, %c0_14, %c0_15] : memref<5x72x128xbf16, #tpu.memory_space<vmem>>, vector<1x72x128xbf16>
    %11 = vector.shape_cast %10 : vector<1x72x128xbf16> to vector<72x128xbf16>
    %c4 = arith.constant 4 : index
    %c0_16 = arith.constant 0 : index
    %c0_17 = arith.constant 0 : index
    %12 = vector.load %arg6[%c4, %c0_16, %c0_17] : memref<5x72x128xbf16, #tpu.memory_space<vmem>>, vector<1x72x128xbf16>
    %13 = vector.shape_cast %12 : vector<1x72x128xbf16> to vector<72x128xbf16>
    %c0_18 = arith.constant 0 : index
    %c0_19 = arith.constant 0 : index
    %14 = vector.load %arg3[%c0_18, %c0_19] : memref<1x144xf32, #tpu.memory_space<vmem>>, vector<1x144xf32>
    %15 = vector.shape_cast %14 : vector<1x144xf32> to vector<1x144xf32>
    %16 = vector.broadcast %15 : vector<1x144xf32> to vector<24x144xf32>
    %c0_20 = arith.constant 0 : index
    %c0_21 = arith.constant 0 : index
    %17 = vector.load %arg7[%c0_20, %c0_21] : memref<1x128xf32, #tpu.memory_space<vmem>>, vector<1x128xf32>
    %18 = vector.shape_cast %17 : vector<1x128xf32> to vector<1x128xf32>
    %19 = vector.broadcast %18 : vector<1x128xf32> to vector<8x128xf32>
    %c0_22 = arith.constant 0 : index
    %c0_23 = arith.constant 0 : index
    %c0_24 = arith.constant 0 : index
    %20 = vector.load %arg1[%c0_22, %c0_23, %c0_24] : memref<2x24x140xf32, #tpu.memory_space<vmem>>, vector<1x24x140xf32>
    %21 = vector.shape_cast %20 : vector<1x24x140xf32> to vector<24x140xf32>
    %cst = arith.constant dense<0.000000e+00> : vector<24x144xf32>
    %22 = tpu.matmul %21, %0, %cst {dimension_numbers = #tpu.dot_dimension_numbers<[1], [0], [0], [1], [0, 0, 1, 1], [], []>} : vector<24x140xf32>, vector<140x144xf32>, vector<24x144xf32> -> vector<24x144xf32>
    %23 = arith.addf %22, %16 : vector<24x144xf32>
    %cst_25 = arith.constant 0.000000e+00 : f32
    %24 = vector.broadcast %cst_25 : f32 to vector<24x144xf32>
    %25 = arith.maximumf %23, %24 : vector<24x144xf32>
    %26 = arith.truncf %25 : vector<24x144xf32> to vector<24x144xbf16>
    %cst_26 = arith.constant dense<0.000000e+00> : vector<12x144xf32>
    %27 = tpu.matmul %1, %26, %cst_26 {dimension_numbers = #tpu.dot_dimension_numbers<[1], [0], [0], [1], [0, 0, 1, 1], [], []>} : vector<12x24xbf16>, vector<24x144xbf16>, vector<12x144xf32> -> vector<12x144xf32>
    %28 = arith.truncf %27 : vector<12x144xf32> to vector<12x144xbf16>
    %cst_27 = arith.constant dense<0.000000e+00> : vector<12x72xf32>
    %29 = tpu.matmul %28, %2, %cst_27 {dimension_numbers = #tpu.dot_dimension_numbers<[1], [0], [0], [1], [0, 0, 1, 1], [], []>} : vector<12x144xbf16>, vector<144x72xbf16>, vector<12x72xf32> -> vector<12x72xf32>
    %30 = vector.extract_strided_slice %29 {offsets = [0, 0], sizes = [8, 72], strides = [1, 1]} : vector<12x72xf32> to vector<8x72xf32>
    %31 = arith.truncf %30 : vector<8x72xf32> to vector<8x72xbf16>
    %cst_28 = arith.constant dense<0.000000e+00> : vector<8x128xf32>
    %32 = tpu.matmul %31, %5, %cst_28 {dimension_numbers = #tpu.dot_dimension_numbers<[1], [0], [0], [1], [0, 0, 1, 1], [], []>} : vector<8x72xbf16>, vector<72x128xbf16>, vector<8x128xf32> -> vector<8x128xf32>
    %33 = vector.extract_strided_slice %29 {offsets = [1, 0], sizes = [8, 72], strides = [1, 1]} : vector<12x72xf32> to vector<8x72xf32>
    %34 = arith.truncf %33 : vector<8x72xf32> to vector<8x72xbf16>
    %cst_29 = arith.constant dense<0.000000e+00> : vector<8x128xf32>
    %35 = tpu.matmul %34, %7, %cst_29 {dimension_numbers = #tpu.dot_dimension_numbers<[1], [0], [0], [1], [0, 0, 1, 1], [], []>} : vector<8x72xbf16>, vector<72x128xbf16>, vector<8x128xf32> -> vector<8x128xf32>
    %36 = arith.addf %32, %35 : vector<8x128xf32>
    %37 = vector.extract_strided_slice %29 {offsets = [2, 0], sizes = [8, 72], strides = [1, 1]} : vector<12x72xf32> to vector<8x72xf32>
    %38 = arith.truncf %37 : vector<8x72xf32> to vector<8x72xbf16>
    %cst_30 = arith.constant dense<0.000000e+00> : vector<8x128xf32>
    %39 = tpu.matmul %38, %9, %cst_30 {dimension_numbers = #tpu.dot_dimension_numbers<[1], [0], [0], [1], [0, 0, 1, 1], [], []>} : vector<8x72xbf16>, vector<72x128xbf16>, vector<8x128xf32> -> vector<8x128xf32>
    %40 = arith.addf %36, %39 : vector<8x128xf32>
    %41 = vector.extract_strided_slice %29 {offsets = [3, 0], sizes = [8, 72], strides = [1, 1]} : vector<12x72xf32> to vector<8x72xf32>
    %42 = arith.truncf %41 : vector<8x72xf32> to vector<8x72xbf16>
    %cst_31 = arith.constant dense<0.000000e+00> : vector<8x128xf32>
    %43 = tpu.matmul %42, %11, %cst_31 {dimension_numbers = #tpu.dot_dimension_numbers<[1], [0], [0], [1], [0, 0, 1, 1], [], []>} : vector<8x72xbf16>, vector<72x128xbf16>, vector<8x128xf32> -> vector<8x128xf32>
    %44 = arith.addf %40, %43 : vector<8x128xf32>
    %45 = vector.extract_strided_slice %29 {offsets = [4, 0], sizes = [8, 72], strides = [1, 1]} : vector<12x72xf32> to vector<8x72xf32>
    %46 = arith.truncf %45 : vector<8x72xf32> to vector<8x72xbf16>
    %cst_32 = arith.constant dense<0.000000e+00> : vector<8x128xf32>
    %47 = tpu.matmul %46, %13, %cst_32 {dimension_numbers = #tpu.dot_dimension_numbers<[1], [0], [0], [1], [0, 0, 1, 1], [], []>} : vector<8x72xbf16>, vector<72x128xbf16>, vector<8x128xf32> -> vector<8x128xf32>
    %48 = arith.addf %44, %47 : vector<8x128xf32>
    %49 = arith.addf %48, %19 : vector<8x128xf32>
    %cst_33 = arith.constant 0.000000e+00 : f32
    %50 = vector.broadcast %cst_33 : f32 to vector<8x128xf32>
    %51 = arith.maximumf %49, %50 : vector<8x128xf32>
    %52 = arith.truncf %51 : vector<8x128xf32> to vector<8x128xbf16>
    %cst_34 = arith.constant dense<0.000000e+00> : vector<4x128xf32>
    %53 = tpu.matmul %3, %52, %cst_34 {dimension_numbers = #tpu.dot_dimension_numbers<[1], [0], [0], [1], [0, 0, 1, 1], [], []>} : vector<4x8xbf16>, vector<8x128xbf16>, vector<4x128xf32> -> vector<4x128xf32>
    %54 = vector.extract_strided_slice %53 {offsets = [0, 0], sizes = [1, 128], strides = [1, 1]} : vector<4x128xf32> to vector<1x128xf32>
    %c0_35 = arith.constant 0 : index
    %c0_36 = arith.constant 0 : index
    %55 = vector.load %arg16[%c0_35, %c0_36] : memref<8x128xf32, #tpu.memory_space<vmem>>, vector<1x128xf32>
    tpu.vector_store %arg16[%c0_35, %c0_36], %54 {strides = array<i32>} : memref<8x128xf32, #tpu.memory_space<vmem>>, vector<1x128xf32>,
    %56 = vector.extract_strided_slice %53 {offsets = [1, 0], sizes = [1, 128], strides = [1, 1]} : vector<4x128xf32> to vector<1x128xf32>
    %c2_37 = arith.constant 2 : index
    %c0_38 = arith.constant 0 : index
    %57 = vector.load %arg16[%c2_37, %c0_38] : memref<8x128xf32, #tpu.memory_space<vmem>>, vector<1x128xf32>
    tpu.vector_store %arg16[%c2_37, %c0_38], %56 {strides = array<i32>} : memref<8x128xf32, #tpu.memory_space<vmem>>, vector<1x128xf32>,
    %58 = vector.extract_strided_slice %53 {offsets = [2, 0], sizes = [1, 128], strides = [1, 1]} : vector<4x128xf32> to vector<1x128xf32>
    %c4_39 = arith.constant 4 : index
    %c0_40 = arith.constant 0 : index
    %59 = vector.load %arg16[%c4_39, %c0_40] : memref<8x128xf32, #tpu.memory_space<vmem>>, vector<1x128xf32>
    tpu.vector_store %arg16[%c4_39, %c0_40], %58 {strides = array<i32>} : memref<8x128xf32, #tpu.memory_space<vmem>>, vector<1x128xf32>,
    %60 = vector.extract_strided_slice %53 {offsets = [3, 0], sizes = [1, 128], strides = [1, 1]} : vector<4x128xf32> to vector<1x128xf32>
    %c6 = arith.constant 6 : index
    %c0_41 = arith.constant 0 : index
    %61 = vector.load %arg16[%c6, %c0_41] : memref<8x128xf32, #tpu.memory_space<vmem>>, vector<1x128xf32>
    tpu.vector_store %arg16[%c6, %c0_41], %60 {strides = array<i32>} : memref<8x128xf32, #tpu.memory_space<vmem>>, vector<1x128xf32>,
    %c1_42 = arith.constant 1 : index
    %c0_43 = arith.constant 0 : index
    %c0_44 = arith.constant 0 : index
    %62 = vector.load %arg1[%c1_42, %c0_43, %c0_44] : memref<2x24x140xf32, #tpu.memory_space<vmem>>, vector<1x24x140xf32>
    %63 = vector.shape_cast %62 : vector<1x24x140xf32> to vector<24x140xf32>
    %cst_45 = arith.constant dense<0.000000e+00> : vector<24x144xf32>
    %64 = tpu.matmul %63, %0, %cst_45 {dimension_numbers = #tpu.dot_dimension_numbers<[1], [0], [0], [1], [0, 0, 1, 1], [], []>} : vector<24x140xf32>, vector<140x144xf32>, vector<24x144xf32> -> vector<24x144xf32>
    %65 = arith.addf %64, %16 : vector<24x144xf32>
    %cst_46 = arith.constant 0.000000e+00 : f32
    %66 = vector.broadcast %cst_46 : f32 to vector<24x144xf32>
    %67 = arith.maximumf %65, %66 : vector<24x144xf32>
    %68 = arith.truncf %67 : vector<24x144xf32> to vector<24x144xbf16>
    %cst_47 = arith.constant dense<0.000000e+00> : vector<12x144xf32>
    %69 = tpu.matmul %1, %68, %cst_47 {dimension_numbers = #tpu.dot_dimension_numbers<[1], [0], [0], [1], [0, 0, 1, 1], [], []>} : vector<12x24xbf16>, vector<24x144xbf16>, vector<12x144xf32> -> vector<12x144xf32>
    %70 = arith.truncf %69 : vector<12x144xf32> to vector<12x144xbf16>
    %cst_48 = arith.constant dense<0.000000e+00> : vector<12x72xf32>
    %71 = tpu.matmul %70, %2, %cst_48 {dimension_numbers = #tpu.dot_dimension_numbers<[1], [0], [0], [1], [0, 0, 1, 1], [], []>} : vector<12x144xbf16>, vector<144x72xbf16>, vector<12x72xf32> -> vector<12x72xf32>
    %72 = vector.extract_strided_slice %71 {offsets = [0, 0], sizes = [8, 72], strides = [1, 1]} : vector<12x72xf32> to vector<8x72xf32>
    %73 = arith.truncf %72 : vector<8x72xf32> to vector<8x72xbf16>
    %cst_49 = arith.constant dense<0.000000e+00> : vector<8x128xf32>
    %74 = tpu.matmul %73, %5, %cst_49 {dimension_numbers = #tpu.dot_dimension_numbers<[1], [0], [0], [1], [0, 0, 1, 1], [], []>} : vector<8x72xbf16>, vector<72x128xbf16>, vector<8x128xf32> -> vector<8x128xf32>
    %75 = vector.extract_strided_slice %71 {offsets = [1, 0], sizes = [8, 72], strides = [1, 1]} : vector<12x72xf32> to vector<8x72xf32>
    %76 = arith.truncf %75 : vector<8x72xf32> to vector<8x72xbf16>
    %cst_50 = arith.constant dense<0.000000e+00> : vector<8x128xf32>
    %77 = tpu.matmul %76, %7, %cst_50 {dimension_numbers = #tpu.dot_dimension_numbers<[1], [0], [0], [1], [0, 0, 1, 1], [], []>} : vector<8x72xbf16>, vector<72x128xbf16>, vector<8x128xf32> -> vector<8x128xf32>
    %78 = arith.addf %74, %77 : vector<8x128xf32>
    %79 = vector.extract_strided_slice %71 {offsets = [2, 0], sizes = [8, 72], strides = [1, 1]} : vector<12x72xf32> to vector<8x72xf32>
    %80 = arith.truncf %79 : vector<8x72xf32> to vector<8x72xbf16>
    %cst_51 = arith.constant dense<0.000000e+00> : vector<8x128xf32>
    %81 = tpu.matmul %80, %9, %cst_51 {dimension_numbers = #tpu.dot_dimension_numbers<[1], [0], [0], [1], [0, 0, 1, 1], [], []>} : vector<8x72xbf16>, vector<72x128xbf16>, vector<8x128xf32> -> vector<8x128xf32>
    %82 = arith.addf %78, %81 : vector<8x128xf32>
    %83 = vector.extract_strided_slice %71 {offsets = [3, 0], sizes = [8, 72], strides = [1, 1]} : vector<12x72xf32> to vector<8x72xf32>
    %84 = arith.truncf %83 : vector<8x72xf32> to vector<8x72xbf16>
    %cst_52 = arith.constant dense<0.000000e+00> : vector<8x128xf32>
    %85 = tpu.matmul %84, %11, %cst_52 {dimension_numbers = #tpu.dot_dimension_numbers<[1], [0], [0], [1], [0, 0, 1, 1], [], []>} : vector<8x72xbf16>, vector<72x128xbf16>, vector<8x128xf32> -> vector<8x128xf32>
    %86 = arith.addf %82, %85 : vector<8x128xf32>
    %87 = vector.extract_strided_slice %71 {offsets = [4, 0], sizes = [8, 72], strides = [1, 1]} : vector<12x72xf32> to vector<8x72xf32>
    %88 = arith.truncf %87 : vector<8x72xf32> to vector<8x72xbf16>
    %cst_53 = arith.constant dense<0.000000e+00> : vector<8x128xf32>
    %89 = tpu.matmul %88, %13, %cst_53 {dimension_numbers = #tpu.dot_dimension_numbers<[1], [0], [0], [1], [0, 0, 1, 1], [], []>} : vector<8x72xbf16>, vector<72x128xbf16>, vector<8x128xf32> -> vector<8x128xf32>
    %90 = arith.addf %86, %89 : vector<8x128xf32>
    %91 = arith.addf %90, %19 : vector<8x128xf32>
    %cst_54 = arith.constant 0.000000e+00 : f32
    %92 = vector.broadcast %cst_54 : f32 to vector<8x128xf32>
    %93 = arith.maximumf %91, %92 : vector<8x128xf32>
    %94 = arith.truncf %93 : vector<8x128xf32> to vector<8x128xbf16>
    %cst_55 = arith.constant dense<0.000000e+00> : vector<4x128xf32>
    %95 = tpu.matmul %3, %94, %cst_55 {dimension_numbers = #tpu.dot_dimension_numbers<[1], [0], [0], [1], [0, 0, 1, 1], [], []>} : vector<4x8xbf16>, vector<8x128xbf16>, vector<4x128xf32> -> vector<4x128xf32>
    %96 = vector.extract_strided_slice %95 {offsets = [0, 0], sizes = [1, 128], strides = [1, 1]} : vector<4x128xf32> to vector<1x128xf32>
    %c1_56 = arith.constant 1 : index
    %c0_57 = arith.constant 0 : index
    %97 = vector.load %arg16[%c1_56, %c0_57] : memref<8x128xf32, #tpu.memory_space<vmem>>, vector<1x128xf32>
    tpu.vector_store %arg16[%c1_56, %c0_57], %96 {strides = array<i32>} : memref<8x128xf32, #tpu.memory_space<vmem>>, vector<1x128xf32>,
    %98 = vector.extract_strided_slice %95 {offsets = [1, 0], sizes = [1, 128], strides = [1, 1]} : vector<4x128xf32> to vector<1x128xf32>
    %c3_58 = arith.constant 3 : index
    %c0_59 = arith.constant 0 : index
    %99 = vector.load %arg16[%c3_58, %c0_59] : memref<8x128xf32, #tpu.memory_space<vmem>>, vector<1x128xf32>
    tpu.vector_store %arg16[%c3_58, %c0_59], %98 {strides = array<i32>} : memref<8x128xf32, #tpu.memory_space<vmem>>, vector<1x128xf32>,
    %100 = vector.extract_strided_slice %95 {offsets = [2, 0], sizes = [1, 128], strides = [1, 1]} : vector<4x128xf32> to vector<1x128xf32>
    %c5 = arith.constant 5 : index
    %c0_60 = arith.constant 0 : index
    %101 = vector.load %arg16[%c5, %c0_60] : memref<8x128xf32, #tpu.memory_space<vmem>>, vector<1x128xf32>
    tpu.vector_store %arg16[%c5, %c0_60], %100 {strides = array<i32>} : memref<8x128xf32, #tpu.memory_space<vmem>>, vector<1x128xf32>,
    %102 = vector.extract_strided_slice %95 {offsets = [3, 0], sizes = [1, 128], strides = [1, 1]} : vector<4x128xf32> to vector<1x128xf32>
    %c7 = arith.constant 7 : index
    %c0_61 = arith.constant 0 : index
    %103 = vector.load %arg16[%c7, %c0_61] : memref<8x128xf32, #tpu.memory_space<vmem>>, vector<1x128xf32>
    tpu.vector_store %arg16[%c7, %c0_61], %102 {strides = array<i32>} : memref<8x128xf32, #tpu.memory_space<vmem>>, vector<1x128xf32>,
    %c0_62 = arith.constant 0 : index
    %c0_63 = arith.constant 0 : index
    %104 = vector.load %arg16[%c0_62, %c0_63] : memref<8x128xf32, #tpu.memory_space<vmem>>, vector<2x128xf32>
    %105 = arith.truncf %104 : vector<2x128xf32> to vector<2x128xbf16>
    %c0_64 = arith.constant 0 : index
    %c0_65 = arith.constant 0 : index
    %c0_66 = arith.constant 0 : index
    %106 = vector.load %arg9[%c0_64, %c0_65, %c0_66] : memref<4x128x128xbf16, #tpu.memory_space<vmem>>, vector<1x128x128xbf16>
    %107 = vector.shape_cast %106 : vector<1x128x128xbf16> to vector<128x128xbf16>
    %cst_67 = arith.constant dense<0.000000e+00> : vector<2x128xf32>
    %108 = tpu.matmul %105, %107, %cst_67 {dimension_numbers = #tpu.dot_dimension_numbers<[1], [0], [0], [1], [0, 0, 1, 1], [], []>} : vector<2x128xbf16>, vector<128x128xbf16>, vector<2x128xf32> -> vector<2x128xf32>
    %c2_68 = arith.constant 2 : index
    %c0_69 = arith.constant 0 : index
    %109 = vector.load %arg16[%c2_68, %c0_69] : memref<8x128xf32, #tpu.memory_space<vmem>>, vector<2x128xf32>
    %110 = arith.truncf %109 : vector<2x128xf32> to vector<2x128xbf16>
    %c1_70 = arith.constant 1 : index
    %c0_71 = arith.constant 0 : index
    %c0_72 = arith.constant 0 : index
    %111 = vector.load %arg9[%c1_70, %c0_71, %c0_72] : memref<4x128x128xbf16, #tpu.memory_space<vmem>>, vector<1x128x128xbf16>
    %112 = vector.shape_cast %111 : vector<1x128x128xbf16> to vector<128x128xbf16>
    %cst_73 = arith.constant dense<0.000000e+00> : vector<2x128xf32>
    %113 = tpu.matmul %110, %112, %cst_73 {dimension_numbers = #tpu.dot_dimension_numbers<[1], [0], [0], [1], [0, 0, 1, 1], [], []>} : vector<2x128xbf16>, vector<128x128xbf16>, vector<2x128xf32> -> vector<2x128xf32>
    %114 = arith.addf %108, %113 : vector<2x128xf32>
    %c4_74 = arith.constant 4 : index
    %c0_75 = arith.constant 0 : index
    %115 = vector.load %arg16[%c4_74, %c0_75] : memref<8x128xf32, #tpu.memory_space<vmem>>, vector<2x128xf32>
    %116 = arith.truncf %115 : vector<2x128xf32> to vector<2x128xbf16>
    %c2_76 = arith.constant 2 : index
    %c0_77 = arith.constant 0 : index
    %c0_78 = arith.constant 0 : index
    %117 = vector.load %arg9[%c2_76, %c0_77, %c0_78] : memref<4x128x128xbf16, #tpu.memory_space<vmem>>, vector<1x128x128xbf16>
    %118 = vector.shape_cast %117 : vector<1x128x128xbf16> to vector<128x128xbf16>
    %cst_79 = arith.constant dense<0.000000e+00> : vector<2x128xf32>
    %119 = tpu.matmul %116, %118, %cst_79 {dimension_numbers = #tpu.dot_dimension_numbers<[1], [0], [0], [1], [0, 0, 1, 1], [], []>} : vector<2x128xbf16>, vector<128x128xbf16>, vector<2x128xf32> -> vector<2x128xf32>
    %120 = arith.addf %114, %119 : vector<2x128xf32>
    %c6_80 = arith.constant 6 : index
    %c0_81 = arith.constant 0 : index
    %121 = vector.load %arg16[%c6_80, %c0_81] : memref<8x128xf32, #tpu.memory_space<vmem>>, vector<2x128xf32>
    %122 = arith.truncf %121 : vector<2x128xf32> to vector<2x128xbf16>
    %c3_82 = arith.constant 3 : index
    %c0_83 = arith.constant 0 : index
    %c0_84 = arith.constant 0 : index
    %123 = vector.load %arg9[%c3_82, %c0_83, %c0_84] : memref<4x128x128xbf16, #tpu.memory_space<vmem>>, vector<1x128x128xbf16>
    %124 = vector.shape_cast %123 : vector<1x128x128xbf16> to vector<128x128xbf16>
    %cst_85 = arith.constant dense<0.000000e+00> : vector<2x128xf32>
    %125 = tpu.matmul %122, %124, %cst_85 {dimension_numbers = #tpu.dot_dimension_numbers<[1], [0], [0], [1], [0, 0, 1, 1], [], []>} : vector<2x128xbf16>, vector<128x128xbf16>, vector<2x128xf32> -> vector<2x128xf32>
    %126 = arith.addf %120, %125 : vector<2x128xf32>
    %c0_86 = arith.constant 0 : index
    %c0_87 = arith.constant 0 : index
    %127 = vector.load %arg10[%c0_86, %c0_87] : memref<1x128xf32, #tpu.memory_space<vmem>>, vector<1x128xf32>
    %128 = vector.broadcast %127 : vector<1x128xf32> to vector<2x128xf32>
    %129 = arith.addf %126, %128 : vector<2x128xf32>
    %cst_88 = arith.constant 0.000000e+00 : f32
    %130 = vector.broadcast %cst_88 : f32 to vector<2x128xf32>
    %131 = arith.maximumf %129, %130 : vector<2x128xf32>
    %132 = arith.truncf %131 : vector<2x128xf32> to vector<2x128xbf16>
    %c0_89 = arith.constant 0 : index
    %c0_90 = arith.constant 0 : index
    %133 = vector.load %arg11[%c0_89, %c0_90] : memref<128x128xbf16, #tpu.memory_space<vmem>>, vector<128x128xbf16>
    %cst_91 = arith.constant dense<0.000000e+00> : vector<2x128xf32>
    %134 = tpu.matmul %132, %133, %cst_91 {dimension_numbers = #tpu.dot_dimension_numbers<[1], [0], [0], [1], [0, 0, 1, 1], [], []>} : vector<2x128xbf16>, vector<128x128xbf16>, vector<2x128xf32> -> vector<2x128xf32>
    %c0_92 = arith.constant 0 : index
    %c0_93 = arith.constant 0 : index
    %135 = vector.load %arg12[%c0_92, %c0_93] : memref<1x128xf32, #tpu.memory_space<vmem>>, vector<1x128xf32>
    %136 = vector.broadcast %135 : vector<1x128xf32> to vector<2x128xf32>
    %137 = arith.addf %134, %136 : vector<2x128xf32>
    %cst_94 = arith.constant 0.000000e+00 : f32
    %138 = vector.broadcast %cst_94 : f32 to vector<2x128xf32>
    %139 = arith.maximumf %137, %138 : vector<2x128xf32>
    %140 = arith.truncf %139 : vector<2x128xf32> to vector<2x128xbf16>
    %c0_95 = arith.constant 0 : index
    %c0_96 = arith.constant 0 : index
    %141 = vector.load %arg13[%c0_95, %c0_96] : memref<128x128xbf16, #tpu.memory_space<vmem>>, vector<128x128xbf16>
    %cst_97 = arith.constant dense<0.000000e+00> : vector<2x128xf32>
    %142 = tpu.matmul %140, %141, %cst_97 {dimension_numbers = #tpu.dot_dimension_numbers<[1], [0], [0], [1], [0, 0, 1, 1], [], []>} : vector<2x128xbf16>, vector<128x128xbf16>, vector<2x128xf32> -> vector<2x128xf32>
    %c0_98 = arith.constant 0 : index
    %c0_99 = arith.constant 0 : index
    %143 = vector.load %arg14[%c0_98, %c0_99] : memref<1x128xf32, #tpu.memory_space<vmem>>, vector<1x128xf32>
    %144 = vector.broadcast %143 : vector<1x128xf32> to vector<2x128xf32>
    %145 = arith.addf %142, %144 : vector<2x128xf32>
    %c0_100 = arith.constant 0 : index
    %c0_101 = arith.constant 0 : index
    %146 = vector.load %arg15[%c0_100, %c0_101] : memref<2x128xf32, #tpu.memory_space<vmem>>, vector<2x128xf32>
    tpu.vector_store %arg15[%c0_100, %c0_101], %145 {strides = array<i32>} : memref<2x128xf32, #tpu.memory_space<vmem>>, vector<2x128xf32>,
    return
  }
  func.func @transform_0(%arg0: i32) -> (i32, i32, i32) {
    %c0_i32 = arith.constant 0 : i32
    %c0_i32_0 = arith.constant 0 : i32
    %c0_i32_1 = arith.constant 0 : i32
    return %arg0, %c0_i32, %c0_i32_0 : i32, i32, i32
  }
  func.func @transform_1(%arg0: i32) -> (i32, i32) {
    %c0_i32 = arith.constant 0 : i32
    %c0_i32_0 = arith.constant 0 : i32
    %c0_i32_1 = arith.constant 0 : i32
    return %c0_i32, %c0_i32_0 : i32, i32
  }
  func.func @transform_2(%arg0: i32) -> (i32, i32) {
    %c0_i32 = arith.constant 0 : i32
    %c0_i32_0 = arith.constant 0 : i32
    %c0_i32_1 = arith.constant 0 : i32
    return %c0_i32, %c0_i32_0 : i32, i32
  }
  func.func @transform_3(%arg0: i32) -> (i32, i32) {
    %c0_i32 = arith.constant 0 : i32
    %c0_i32_0 = arith.constant 0 : i32
    %c0_i32_1 = arith.constant 0 : i32
    return %c0_i32, %c0_i32_0 : i32, i32
  }
  func.func @transform_4(%arg0: i32) -> (i32, i32) {
    %c0_i32 = arith.constant 0 : i32
    %c0_i32_0 = arith.constant 0 : i32
    %c0_i32_1 = arith.constant 0 : i32
    return %c0_i32, %c0_i32_0 : i32, i32
  }
  func.func @transform_5(%arg0: i32) -> (i32, i32, i32) {
    %c0_i32 = arith.constant 0 : i32
    %c0_i32_0 = arith.constant 0 : i32
    %c0_i32_1 = arith.constant 0 : i32
    %c0_i32_2 = arith.constant 0 : i32
    return %c0_i32, %c0_i32_0, %c0_i32_1 : i32, i32, i32
  }
  func.func @transform_6(%arg0: i32) -> (i32, i32) {
    %c0_i32 = arith.constant 0 : i32
    %c0_i32_0 = arith.constant 0 : i32
    %c0_i32_1 = arith.constant 0 : i32
    return %c0_i32, %c0_i32_0 : i32, i32
  }
  func.func @transform_7(%arg0: i32) -> (i32, i32) {
    %c0_i32 = arith.constant 0 : i32
    %c0_i32_0 = arith.constant 0 : i32
    %c0_i32_1 = arith.constant 0 : i32
    return %c0_i32, %c0_i32_0 : i32, i32
  }
  func.func @transform_8(%arg0: i32) -> (i32, i32, i32) {
    %c0_i32 = arith.constant 0 : i32
    %c0_i32_0 = arith.constant 0 : i32
    %c0_i32_1 = arith.constant 0 : i32
    %c0_i32_2 = arith.constant 0 : i32
    return %c0_i32, %c0_i32_0, %c0_i32_1 : i32, i32, i32
  }
  func.func @transform_9(%arg0: i32) -> (i32, i32) {
    %c0_i32 = arith.constant 0 : i32
    %c0_i32_0 = arith.constant 0 : i32
    %c0_i32_1 = arith.constant 0 : i32
    return %c0_i32, %c0_i32_0 : i32, i32
  }
  func.func @transform_10(%arg0: i32) -> (i32, i32) {
    %c0_i32 = arith.constant 0 : i32
    %c0_i32_0 = arith.constant 0 : i32
    %c0_i32_1 = arith.constant 0 : i32
    return %c0_i32, %c0_i32_0 : i32, i32
  }
  func.func @transform_11(%arg0: i32) -> (i32, i32) {
    %c0_i32 = arith.constant 0 : i32
    %c0_i32_0 = arith.constant 0 : i32
    %c0_i32_1 = arith.constant 0 : i32
    return %c0_i32, %c0_i32_0 : i32, i32
  }
  func.func @transform_12(%arg0: i32) -> (i32, i32) {
    %c0_i32 = arith.constant 0 : i32
    %c0_i32_0 = arith.constant 0 : i32
    %c0_i32_1 = arith.constant 0 : i32
    return %c0_i32, %c0_i32_0 : i32, i32
  }
  func.func @transform_13(%arg0: i32) -> (i32, i32) {
    %c0_i32 = arith.constant 0 : i32
    %c0_i32_0 = arith.constant 0 : i32
    %c0_i32_1 = arith.constant 0 : i32
    return %c0_i32, %c0_i32_0 : i32, i32
  }
  func.func @transform_14(%arg0: i32) -> (i32, i32) {
    %c0_i32 = arith.constant 0 : i32
    %c0_i32_0 = arith.constant 0 : i32
    return %arg0, %c0_i32 : i32, i32
  }
}

</mosaic_0001>

<bundles_post_ra>
// kernel: lenet5_forward.1
= control target key start
LH: loop header
LB: loop body
LE: loop exit
PB: predicated region body
PF: predicated region fallthrough
CT: control target
= control target key end

     0   :  { %vm181_vm0 = vcmask 1043456   ;;  %vm171_vm1 = vcmask 97280   ;;  %s2934_s0 = inlined_call_operand.vmem [shape: f32[2,24,140], index: 0, kind: input, shape index: {}]   ;;  %s2935_s1 = inlined_call_operand.vmem [shape: f32[140,144], index: 1, kind: input, shape index: {}]   ;;  %s2936_s2 = inlined_call_operand.vmem [shape: f32[1,144], index: 2, kind: input, shape index: {}]   ;;  %s2937_s3 = inlined_call_operand.vmem [shape: bf16[12,24], index: 3, kind: input, shape index: {}]   ;;  %s2938_s4 = inlined_call_operand.vmem [shape: bf16[144,72], index: 4, kind: input, shape index: {}]   ;;  %s2939_s5 = inlined_call_operand.vmem [shape: bf16[5,72,128], index: 5, kind: input, shape index: {}]   ;;  %s2940_s6 = inlined_call_operand.vmem [shape: f32[1,128], index: 6, kind: input, shape index: {}]   ;;  %s2941_s7 = inlined_call_operand.vmem [shape: bf16[4,8], index: 7, kind: input, shape index: {}]   ;;  %s2942_s8 = inlined_call_operand.vmem [shape: bf16[4,128,128], index: 8, kind: input, shape index: {}]   ;;  %s2943_s9 = inlined_call_operand.vmem [shape: f32[1,128], index: 9, kind: input, shape index: {}]   ;;  %s2944_s10 = inlined_call_operand.vmem [shape: bf16[128,128], index: 10, kind: input, shape index: {}]   ;;  %s2945_s11 = inlined_call_operand.vmem [shape: f32[1,128], index: 11, kind: input, shape index: {}]   ;;  %s2946_s12 = inlined_call_operand.vmem [shape: bf16[128,128], index: 12, kind: input, shape index: {}]   ;;  %s2947_s13 = inlined_call_operand.vmem [shape: f32[1,128], index: 13, kind: input, shape index: {}]   ;;  %s2948_s14 = inlined_call_operand.hbm [shape: f32[2,128], index: 14, kind: output, shape index: {}]  }
   0x1   :  { %v2162_v0 = vld [vmem:[%s2935_s1 + $0xf8] sm:$0xff]  ;;  %v2167_v1 = vld [vmem:[%s2935_s1 + $0xe8] sm:$0xff]  ;;  %v2173_v2 = vld [vmem:[%s2935_s1 + $0xf0] sm:$0xff] }
   0x2   :  { %240 = vmatpush.msra.mxu2 %v2162_v0  ;;  %v2178_v3 = vld [vmem:[%s2935_s1 + $0xe0] sm:$0xff]  ;;  %v2183_v4 = vld [vmem:[%s2935_s1 + $0xd8] sm:$0xff]  ;;  %188 = vmatpush.msra.mxu0 %v2173_v2  ;;  %v2190_v5 = vld [vmem:[%s2935_s1 + $0xd0] sm:$0xff] }
   0x3   :  { %v2195_v6 = vld [vmem:[%s2935_s1 + $0xc8] sm:$0xff]  ;;  %v2202_v7 = vld [vmem:[%s2935_s1 + $0xc0] sm:$0xff]  ;;  %v2207_v8 = vld [vmem:[%s2935_s1 + $0xb8] sm:$0xff] }
   0x4   :  { %241 = vmatpush.msra.mxu2 %v2167_v1  ;;  %189 = vmatpush.msra.mxu0 %v2178_v3  ;;  %v2214_v9 = vld [vmem:[%s2935_s1 + $0xb0] sm:$0xff]  ;;  %v2219_v10 = vld [vmem:[%s2935_s1 + $0xa8] sm:$0xff]  ;;  %v2226_v11 = vld [vmem:[%s2935_s1 + $0xa0] sm:$0xff] }
   0x5   :  { %v2231_v12 = vld [vmem:[%s2935_s1 + $0x98] sm:$0xff]  ;;  %v2237_v13 = vld [vmem:[%s2935_s1 + $0x88] sm:$0xff]  ;;  %v2243_v14 = vld [vmem:[%s2935_s1 + $0x90] sm:$0xff] }
   0x6   :  { %242 = vmatpush.msra.mxu2 %v2183_v4  ;;  %190 = vmatpush.msra.mxu0 %v2190_v5  ;;  %v2248_v15 = vld [vmem:[%s2935_s1 + $0x110] sm:$0xf]  ;;  %v2253_v16 = vld [vmem:[%s2935_s1 + $0x100] sm:$0xff]  ;;  %v2259_v17 = vld [vmem:[%s2935_s1 + $0x78] sm:$0xff] }
   0x7   :  { %1572 = vmatpush.msk.msra.mxu1 %vm181_vm0, %v2248_v15  ;;  %v166_v18 = vld [vmem:[%s2934_s0 + $0x8] sm:$0xff]  ;;  %v2269_v19 = vld [vmem:[%s2935_s1 + $0x118] sm:$0xf]  ;;  %v2275_v20 = vld [vmem:[%s2935_s1 + $0x80] sm:$0xff] }
   0x8   :  { %243 = vmatpush.msra.mxu2 %v2195_v6  ;;  %191 = vmatpush.msra.mxu0 %v2202_v7 }
   0x9   :  { %2050 = vmatpush.msk.msra.mxu3 %vm181_vm0, %v2269_v19  ;;  %229 = vmatpush.msra.mxu1 %v2253_v16 }
   0xa   :  { %244 = vmatpush.msra.mxu2 %v2207_v8  ;;  %192 = vmatpush.msra.mxu0 %v2214_v9 }
   0xc   :  { %245 = vmatpush.msra.mxu2 %v2219_v10  ;;  %193 = vmatpush.msra.mxu0 %v2226_v11 }
   0xe   :  { %246 = vmatpush.msra.mxu2 %v2231_v12  ;;  %194 = vmatpush.msra.mxu0 %v2243_v14 }
   0xf   :  { %19 = vsyncpa [#allocation4], 0  ;;  %v2285_v21 = vld [vmem:[%s2935_s1 + $0x70] sm:$0xff]  ;;  %1573 = vmatmul.msk.f32.vlgmr.msra.gmra.mxu1 %vm171_vm1, %v166_v18  ;;  %v2291_v22 = vld [vmem:[%s2935_s1 + $0x68] sm:$0xff]  ;;  %vm307_vm2 = vcmask 195584   ;;  %vm401_vm3 = vcmask 130048  }
  0x10   :  { %247 = vmatpush.msra.mxu2 %v2237_v13  ;;  %195 = vmatpush.msra.mxu0 %v2275_v20  ;;  %v2297_v23 = vld [vmem:[%s2935_s1 + $0x108] sm:$0xff]  ;;  %v2306_v25 = vld [vmem:[%s2935_s1 + $0x60] sm:$0xff]  ;;  %v2312_v26 = vld [vmem:[%s2935_s1 + $0x58] sm:$0xff]  ;;  %vm469_vm4 = vcmask 588800   ;;  %vm685_vm5 = vcmask 64512   ;;  %s2083_s23 = smov [#allocation3]  }
  0x11   :  { %v170_v24 = vld [vmem:[%s2934_s0 + $0x28] sm:$0xff]  ;;  %2051 = vmatpush.msra.mxu3 %v2297_v23  ;;  %v2320_v27 = vld [vmem:[%s2935_s1 + $0x50] sm:$0xff]  ;;  %v168_v29 = vld [vmem:[%s2934_s0 + $0x18] sm:$0xff]  ;;  %s1525_s24 = sshll.u32 %s2083_s23, 4  ;;  %s1526_s24 = int_to_ptr.vmem [resolvable:$true] %s1525_s24 }
  0x12   :  { %248 = vmatpush.msra.mxu2 %v2259_v17  ;;  %196 = vmatpush.msra.mxu0 %v2285_v21  ;;  %v2325_v28 = vld [vmem:[%s2935_s1 + $0x48] sm:$0xff]  ;;  %v2335_v30 = vld [vmem:[%s2935_s1 + $0x40] sm:$0xff]  ;;  %v2340_v31 = vld [vmem:[%s2935_s1 + $0x38] sm:$0xff] }
  0x13   :  { %1579 = vmatmul.msk.f32.vlgmr.msra.gmra.mxu3 %vm171_vm1, %v170_v24  ;;  %v2347_v32 = vld [vmem:[%s2935_s1 + $0x30] sm:$0xff]  ;;  %v2353_v33 = vld [vmem:[%s2935_s1 + $0x28] sm:$0xff]  ;;  %v2360_v34 = vld [vmem:[%s2935_s1 + $0x20] sm:$0xff] }
  0x14   :  { %249 = vmatpush.msra.mxu2 %v2291_v22  ;;  %197 = vmatpush.msra.mxu0 %v2306_v25  ;;  %v2365_v35 = vld [vmem:[%s2935_s1 + $0x18] sm:$0xff]  ;;  %v2372_v36 = vld [vmem:[%s2935_s1 + $0x10] sm:$0xff]  ;;  %v2377_v37 = vld [vmem:[%s2935_s1 + $0x8] sm:$0xff] }
  0x15   :  { %v165_v38 = vld [vmem:[%s2934_s0] sm:$0xff]  ;;  %v167_v40 = vld [vmem:[%s2934_s0 + $0x10] sm:$0xff] }
  0x16   :  { %250 = vmatpush.msra.mxu2 %v2312_v26  ;;  %198 = vmatpush.msra.mxu0 %v2320_v27  ;;  %v2387_v39 = vld [vmem:[%s2935_s1] sm:$0xff] }
  0x17   :  { %1574 = vmatmul.msk.f32.gmra.mxu1 %vm171_vm1, %v168_v29  ;;  %v169_v41 = vld [vmem:[%s2934_s0 + $0x20] sm:$0xff] }
  0x18   :  { %251 = vmatpush.msra.mxu2 %v2325_v28  ;;  %199 = vmatpush.msra.mxu0 %v2335_v30  ;;  %v155_v47 = vld [vmem:[%s2936_s2] sm:$0x3] }
  0x19   :  { %v2407_v48 = vperm.slane %v155_v47, 0  ;;  %v2412_v58 = vperm.slane %v155_v47, 1 }
  0x1a   :  { %252 = vmatpush.msra.mxu2 %v2340_v31  ;;  %200 = vmatpush.msra.mxu0 %v2347_v32 }
  0x1b   :  { %2958 = vst [vmem:[#allocation6_spill] sm:$0xff] %v2412_v58 }
  0x1c   :  { %253 = vmatpush.msra.mxu2 %v2353_v33  ;;  %201 = vmatpush.msra.mxu0 %v2360_v34 }
  0x1e   :  { %254 = vmatpush.msra.mxu2 %v2365_v35  ;;  %202 = vmatpush.msra.mxu0 %v2372_v36 }
  0x1f   :  { %1575 = vmatmul.msk.f32.gmra.mxu1 %vm171_vm1, %v170_v24 }
  0x20   :  { %255 = vmatpush.msra.mxu2 %v2377_v37  ;;  %203 = vmatpush.msra.mxu0 %v2387_v39 }
  0x21   :  { %256 = vmatmul.f32.vlgmr.msra.gmra.mxu2 %v165_v38  ;;  %204 = vmatmul.f32.vlgmr.msra.gmra.mxu0 %v165_v38 }
  0x22   :  { %1576 = vmatpush.msk.msrb.mxu2 %vm181_vm0, %v2269_v19 }
  0x24   :  { %281 = vmatpush.msrb.mxu2 %v2297_v23 }
  0x29   :  { %259 = vmatmul.f32.gmra.mxu2 %v167_v40  ;;  %207 = vmatmul.f32.gmra.mxu0 %v167_v40 }
  0x31   :  { %262 = vmatmul.f32.gmra.mxu2 %v169_v41  ;;  %210 = vmatmul.f32.gmra.mxu0 %v169_v41 }
  0x39   :  { %1577 = vmatmul.msk.f32.vlgmr.msrb.gmra.mxu2 %vm171_vm1, %v166_v18 }
  0x41   :  { %1578 = vmatmul.msk.f32.gmra.mxu2 %vm171_vm1, %v168_v29 }
  0x8c   :  { %v231_v42 = vpop.f32.mrf.mxu1 }
  0x94   :  { %v234_v45 = vpop.f32.mrf.mxu1 }
  0x96   :  { %v289_v61 = vpop.f32.mrf.mxu3 }
  0x9c   :  { %v237_v53 = vpop.f32.mrf.mxu1 }
  0x9e   :  { %v205_v43 = vpop.f32.mrf.mxu0 }
  0x9f   :  { %v206_v50 = vadd.f32 %v205_v43, %v2407_v48  ;;  %v1972_v43 = vld [vmem:[%s2937_s3] sm:$0x30] }
  0xa1   :  { %v232_v55 = vadd.f32 %v231_v42, %v206_v50  ;;  %v1582_v42 = vld [vmem:[%s2937_s3] sm:$0xf] }
  0xa2   :  { %v2427_v50 = vor.u32 %v1972_v43, %v1582_v42 }
  0xa3   :  { %v292_v62 = vmax.f32 %v232_v55, 0.0 }
  0xa4   :  { %v257_v44 = vpop.f32.mrf.mxu2  ;;  %2959 = vst [vmem:[#allocation7_spill] sm:$0xff] %v2427_v50 }
  0xa6   :  { %v208_v46 = vpop.f32.mrf.mxu0 }
  0xa7   :  { %v209_v51 = vadd.f32 %v208_v46, %v2407_v48 }
  0xa9   :  { %v235_v56 = vadd.f32 %v234_v45, %v209_v51  ;;  %v2425_v45 = vld [vmem:[%s2938_s4 + $0x38] sm:$0xff] }
  0xab   :  { %v294_v63 = vmax.f32 %v235_v56, 0.0 }
  0xac   :  { %v260_v49 = vpop.f32.mrf.mxu2 }
  0xad   :  { %v298_v41 = vpack.c.bf16 %v294_v63, %v292_v62  ;;  %v261_v55 = vadd.f32 %v260_v49, %v2412_v58  ;;  %v2456_v63 = vld [vmem:[%s2938_s4 + $0x18] sm:$0xff]  ;;  %v2464_v49 = vld [vmem:[%s2938_s4 + $0x10] sm:$0xff] }
  0xae   :  { %v211_v52 = vpop.f32.mrf.mxu0 }
  0xaf   :  { %v212_v54 = vadd.f32 %v211_v52, %v2407_v48  ;;  %v2434_v52 = vld [vmem:[%s2938_s4 + $0x30] sm:$0xff] }
  0xb1   :  { %v238_v57 = vadd.f32 %v237_v53, %v212_v54  ;;  %v258_v53 = vadd.f32 %v257_v44, %v2412_v58  ;;  %v2443_v54 = vld [vmem:[%s2938_s4 + $0x28] sm:$0xff] }
  0xb3   :  { %v296_v60 = vmax.f32 %v238_v57, 0.0 }
  0xb4   :  { %v263_v59 = vpop.f32.mrf.mxu2 }
  0xb5   :  { %v264_v18 = vadd.f32 %v263_v59, %v2412_v58  ;;  %v300_v24 = vpack.c.bf16 %v296_v60, %v296_v60  ;;  %v2450_v60 = vld [vmem:[%s2938_s4 + $0x20] sm:$0xff] }
  0xb7   :  { %v290_v29 = vadd.f32 %v289_v61, %v264_v18  ;;  %v312_v38 = vsel %vm181_vm0, %v300_v24, 0  ;;  %v2470_v18 = vld [vmem:[%s2938_s4 + $0x8] sm:$0xff]  ;;  %v2476_v24 = vld [vmem:[%s2938_s4] sm:$0xff] }
  0xb8   :  { %323 = vmatpush.bf16.msrb.mxu1 %v312_v38 }
  0xb9   :  { %v297_v40 = vmax.f32 %v290_v29, 0.0  ;;  %v2482_v29 = vld [vmem:[%s2938_s4 + $0x40] sm:$0xff] }
  0xbb   :  { %v301_v46 = vpack.c.bf16 %v297_v40, %v297_v40 }
  0xbc   :  { %v283_v47 = vpop.f32.mrf.mxu2  ;;  %324 = vmatpush.bf16.msrb.mxu1 %v298_v41 }
  0xbd   :  { %v315_v51 = vsel %vm181_vm0, %v301_v46, 0  ;;  %v284_v56 = vadd.f32 %v283_v47, %v258_v53  ;;  %v114_v47 = vld [vmem:[%s2939_s5 + $0x20] sm:$0xf] }
  0xbe   :  { %337 = vmatpush.bf16.msrb.mxu3 %v315_v51  ;;  %v506_v51 = vunpack.c.l.b16 %v114_v47 }
  0xbf   :  { %1584 = vmatmul.msk.bf16.vlgmr.msrb.gmra.mxu1 %vm307_vm2, %v2427_v50  ;;  %v293_v44 = vmax.f32 %v284_v56, 0.0  ;;  %v2496_v56 = vld [vmem:[%s2939_s5 + $0x18] sm:$0xff] }
  0xc0   :  { %405 = vmatpush.bf16.msra.mxu1 %v2425_v45  ;;  %v511_v53 = vpack.c.b16 %v506_v51, %v506_v51  ;;  %2961 = vst [vmem:[#allocation9_spill] sm:$0xff] %v2496_v56  ;;  %v2531_v51 = vld [vmem:[%s2939_s5 + $0x60] sm:$0xff] }
  0xc4   :  { %406 = vmatpush.bf16.msra.mxu1 %v2434_v52  ;;  %v286_v57 = vpop.f32.mrf.mxu2 }
  0xc5   :  { %v287_v59 = vadd.f32 %v286_v57, %v261_v55  ;;  %v2490_v55 = vsel %vm181_vm0, %v511_v53, 0  ;;  %v1553_v57 = vld [vmem:[%s2939_s5 + $0x68] sm:$0xf]  ;;  %v2536_v53 = vld [vmem:[%s2939_s5] sm:$0xff] }
  0xc6   :  { %2960 = vst [vmem:[#allocation8_spill] sm:$0xff] %v2490_v55  ;;  %525 = vmatpush.bf16.msra.mxu2 %v2490_v55  ;;  %v2603_v55 = vld [vmem:[%s2939_s5 + $0x24] sm:$0xff] }
  0xc7   :  { %v295_v61 = vmax.f32 %v287_v59, 0.0  ;;  %v554_v59 = vunpack.c.l.b16 %v1553_v57  ;;  %2964 = vst [vmem:[#allocation12_spill] sm:$0xff] %v2536_v53 }
  0xc8   :  { %407 = vmatpush.bf16.msra.mxu1 %v2443_v54 }
  0xc9   :  { %v299_v62 = vpack.c.bf16 %v295_v61, %v293_v44  ;;  %v1544_v44 = vld [vmem:[%s2939_s5 + $0x44] sm:$0xf]  ;;  %v2508_v61 = vld [vmem:[%s2939_s5 + $0x10] sm:$0xff] }
  0xca   :  { %526 = vmatpush.bf16.msra.mxu2 %v2496_v56  ;;  %2962 = vst [vmem:[#allocation10_spill] sm:$0xff] %v2508_v61  ;;  %v2598_v56 = vld [vmem:[%s2939_s5 + $0x98] sm:$0xff] }
  0xcb   :  { %338 = vmatpush.bf16.msrb.mxu3 %v299_v62  ;;  %v459_v62 = vunpack.c.l.b16 %v1544_v44  ;;  %v2546_v44 = vld [vmem:[%s2939_s5 + $0x3c] sm:$0xff] }
  0xcc   :  { %408 = vmatpush.bf16.msra.mxu1 %v2450_v60 }
  0xce   :  { %1585 = vmatmul.msk.bf16.vlgmr.msrb.gmra.mxu3 %vm307_vm2, %v2427_v50  ;;  %527 = vmatpush.bf16.msra.mxu2 %v2508_v61  ;;  %v2614_v50 = vld [vmem:[%s2939_s5 + $0x90] sm:$0xff] }
  0xcf   :  { %426 = vmatpush.bf16.msra.mxu3 %v2482_v29 }
  0xd0   :  { %409 = vmatpush.bf16.msra.mxu1 %v2456_v63 }
  0xd4   :  { %410 = vmatpush.bf16.msra.mxu1 %v2464_v49 }
  0xd8   :  { %411 = vmatpush.bf16.msra.mxu1 %v2470_v18 }
  0xdc   :  { %412 = vmatpush.bf16.msra.mxu1 %v2476_v24 }
 0x13c   :  { %v326_v38 = vpop.f32.mrf.mxu1 }
 0x144   :  { %v328_v40 = vpop.f32.mrf.mxu1 }
 0x145   :  { %v345_v41 = vpack.c.bf16 %v328_v40, %v326_v38  ;;  %v559_v38 = vpack.c.b16 %v554_v59, %v554_v59  ;;  %v464_v40 = vpack.c.b16 %v459_v62, %v459_v62  ;;  %v2552_v62 = vld [vmem:[%s2939_s5 + $0x58] sm:$0xff] }
 0x147   :  { %413 = vmatmul.bf16.vlgmr.msra.gmra.mxu1 %v345_v41  ;;  %v2511_v41 = vsel %vm181_vm0, %v559_v38, 0  ;;  %v2559_v38 = vld [vmem:[%s2939_s5 + $0xa8] sm:$0xff] }
 0x148   :  { %573 = vmatpush.bf16.msrb.mxu3 %v2511_v41 }
 0x14c   :  { %574 = vmatpush.bf16.msrb.mxu3 %v2531_v51 }
 0x150   :  { %575 = vmatpush.bf16.msrb.mxu3 %v2552_v62 }
 0x151   :  { %v340_v42 = vpop.f32.mrf.mxu3 }
 0x159   :  { %v342_v43 = vpop.f32.mrf.mxu3 }
 0x15a   :  { %v346_v46 = vpack.c.bf16 %v342_v43, %v340_v42  ;;  %v2518_v42 = vld [vmem:[%s2939_s5 + $0x8] sm:$0xff]  ;;  %v2521_v43 = vsel %vm181_vm0, %v464_v40, 0  ;;  %v2564_v40 = vld [vmem:[%s2939_s5 + $0x34] sm:$0xff] }
 0x15b   :  { %2963 = vst [vmem:[#allocation11_spill] sm:$0xff] %v2518_v42  ;;  %479 = vmatpush.bf16.msrb.mxu0 %v2521_v43  ;;  %528 = vmatpush.bf16.msra.mxu2 %v2518_v42  ;;  %v1562_v42 = vld [vmem:[%s2939_s5 + $0x8c] sm:$0xf] }
 0x15c   :  { %1622 = vmatmul.msk.bf16.vlgmr.msra.gmra.mxu3 %vm401_vm3, %v346_v46  ;;  %v1571_v46 = vld [vmem:[%s2939_s5 + $0xb0] sm:$0xf]  ;;  %v604_v61 = vunpack.c.l.b16 %v1562_v42 }
 0x15d   :  { %v652_v47 = vunpack.c.l.b16 %v1571_v46  ;;  %v2570_v46 = vld [vmem:[%s2939_s5 + $0x50] sm:$0xff] }
 0x15e   :  { %576 = vmatpush.bf16.msrb.mxu3 %v2570_v46  ;;  %v609_v58 = vpack.c.b16 %v604_v61, %v604_v61 }
 0x15f   :  { %v657_v57 = vpack.c.b16 %v652_v47, %v652_v47  ;;  %529 = vmatpush.bf16.msra.mxu2 %v2536_v53  ;;  %480 = vmatpush.bf16.msrb.mxu0 %v2546_v44  ;;  %v2577_v47 = vld [vmem:[%s2939_s5 + $0xa0] sm:$0xff]  ;;  %v2588_v53 = vld [vmem:[%s2939_s5 + $0x48] sm:$0xff] }
 0x160   :  { %v2609_v42 = vsel %vm181_vm0, %v609_v58, 0  ;;  %v2630_v58 = vld [vmem:[%s2939_s5 + $0x7c] sm:$0xff] }
 0x161   :  { %v2541_v59 = vsel %vm181_vm0, %v657_v57, 0  ;;  %v2582_v57 = vld [vmem:[%s2939_s5 + $0x2c] sm:$0xff] }
 0x162   :  { %577 = vmatpush.bf16.msrb.mxu3 %v2588_v53 }
 0x163   :  { %671 = vmatpush.bf16.msrb.mxu2 %v2541_v59  ;;  %481 = vmatpush.bf16.msrb.mxu0 %v2564_v40 }
 0x166   :  { %725 = vmatpush.msra.mxu3 %v2173_v2  ;;  %v2623_v2 = vld [vmem:[%s2939_s5 + $0x84] sm:$0xff] }
 0x167   :  { %672 = vmatpush.bf16.msrb.mxu2 %v2559_v38  ;;  %482 = vmatpush.bf16.msrb.mxu0 %v2582_v57 }
 0x168   :  { %726 = vmatpush.msra.mxu3 %v2178_v3  ;;  %v2638_v3 = vld [vmem:[%s2939_s5 + $0x74] sm:$0xff] }
 0x16a   :  { %727 = vmatpush.msra.mxu3 %v2190_v5  ;;  %v2646_v5 = vld [vmem:[%s2939_s5 + $0x6c] sm:$0xff] }
 0x16b   :  { %673 = vmatpush.bf16.msrb.mxu2 %v2577_v47  ;;  %483 = vmatpush.bf16.msrb.mxu0 %v2603_v55 }
 0x16c   :  { %728 = vmatpush.msra.mxu3 %v2202_v7 }
 0x16e   :  { %729 = vmatpush.msra.mxu3 %v2214_v9 }
 0x16f   :  { %674 = vmatpush.bf16.msrb.mxu2 %v2598_v56  ;;  %623 = vmatpush.bf16.msra.mxu0 %v2609_v42 }
 0x170   :  { %730 = vmatpush.msra.mxu3 %v2226_v11 }
 0x172   :  { %731 = vmatpush.msra.mxu3 %v2243_v14 }
 0x173   :  { %675 = vmatpush.bf16.msrb.mxu2 %v2614_v50  ;;  %624 = vmatpush.bf16.msra.mxu0 %v2623_v2 }
 0x174   :  { %732 = vmatpush.msra.mxu3 %v2275_v20 }
 0x176   :  { %733 = vmatpush.msra.mxu3 %v2285_v21 }
 0x177   :  { %625 = vmatpush.bf16.msra.mxu0 %v2630_v58 }
 0x178   :  { %734 = vmatpush.msra.mxu3 %v2306_v25 }
 0x17a   :  { %735 = vmatpush.msra.mxu3 %v2320_v27 }
 0x17b   :  { %626 = vmatpush.bf16.msra.mxu0 %v2638_v3 }
 0x17c   :  { %736 = vmatpush.msra.mxu3 %v2335_v30 }
 0x17e   :  { %737 = vmatpush.msra.mxu3 %v2347_v32 }
 0x17f   :  { %627 = vmatpush.bf16.msra.mxu0 %v2646_v5 }
 0x180   :  { %738 = vmatpush.msra.mxu3 %v2360_v34 }
 0x182   :  { %739 = vmatpush.msra.mxu3 %v2372_v36 }
 0x184   :  { %740 = vmatpush.msra.mxu3 %v2387_v39 }
 0x1c4   :  { %v414_v7 = vpop.f32.mrf.mxu1 }
 0x1cc   :  { %v416_v20 = vpop.f32.mrf.mxu1 }
 0x1df   :  { %v428_v9 = vpop.f32.mrf.mxu3 }
 0x1e0   :  { %v429_v11 = vadd.f32 %v428_v9, %v414_v7 }
 0x1e2   :  { %v433_v14 = vpack.c.bf16 %v429_v11, %v429_v11 }
 0x1e4   :  { %1656 = vmatmul.msk.bf16.vlgmr.msra.gmra.mxu2 %vm469_vm4, %v433_v14 }
 0x1e5   :  { %1719 = vmatpush.msk.msra.mxu2 %vm181_vm0, %v2269_v19 }
 0x1e7   :  { %v430_v21 = vpop.f32.mrf.mxu3  ;;  %818 = vmatpush.msra.mxu2 %v2297_v23 }
 0x1e8   :  { %v431_v25 = vadd.f32 %v430_v21, %v416_v20  ;;  %v1713_v21 = vld [vmem:[%s2934_s0 + $0x50] sm:$0xff] }
 0x1ea   :  { %v434_v27 = vpack.c.bf16 %v431_v25, %v429_v11  ;;  %v1712_v25 = vld [vmem:[%s2934_s0 + $0x48] sm:$0xff] }
 0x1ec   :  { %v438_v30 = vshll.u32 %v434_v27, 16  ;;  %v536_v61 = vrot.slane %v434_v27, 1  ;;  %v436_v32 = vshrl.u32 %v434_v27, 16  ;;  %v634_v34 = vrot.slane %v434_v27, 2  ;;  %v2696_v27 = vld [vmem:[%s2940_s6] ss:$0 sm:$0xff] }
 0x1ee   :  { %1673 = vmatmul.msk.bf16.vlgmr.msrb.gmra.mxu3 %vm469_vm4, %v536_v61  ;;  %v440_v7 = vrot.slane %v438_v30, 1  ;;  %v585_v23 = vrot.slane %v438_v30, 2  ;;  %v584_v36 = vrot.slane %v436_v32, 1 }
 0x1ef   :  { %878 = vmatpush.bf16.msrb.mxu3 %v2425_v45 }
 0x1f0   :  { %v441_v19 = vor.u32 %v440_v7, %v436_v32  ;;  %v586_v39 = vor.u32 %v585_v23, %v584_v36  ;;  %v1714_v7 = vld [vmem:[%s2934_s0 + $0x58] sm:$0xff]  ;;  %v2709_v23 = vld [vmem:[%s2941_s7] sm:$0x3] }
 0x1f2   :  { %1639 = vmatmul.msk.bf16.vlgmr.msrb.gmra.mxu0 %vm469_vm4, %v441_v19 }
 0x1f3   :  { %879 = vmatpush.bf16.msrb.mxu3 %v2434_v52  ;;  %v1709_v52 = vld [vmem:[%s2934_s0 + $0x30] sm:$0xff] }
 0x1f4   :  { %1707 = vmatmul.msk.bf16.vlgmr.msrb.gmra.mxu2 %vm469_vm4, %v634_v34 }
 0x1f7   :  { %880 = vmatpush.bf16.msrb.mxu3 %v2443_v54 }
 0x1fb   :  { %881 = vmatpush.bf16.msrb.mxu3 %v2450_v60 }
 0x1fe   :  { %741 = vmatmul.f32.vlgmr.msra.gmra.mxu3 %v1709_v52 }
 0x1ff   :  { %882 = vmatpush.bf16.msrb.mxu3 %v2456_v63 }
 0x202   :  { %1690 = vmatmul.msk.bf16.vlgmr.msra.gmra.mxu0 %vm469_vm4, %v586_v39 }
 0x203   :  { %883 = vmatpush.bf16.msrb.mxu3 %v2464_v49  ;;  %v1711_v49 = vld [vmem:[%s2934_s0 + $0x40] sm:$0xff] }
 0x206   :  { %744 = vmatmul.f32.gmra.mxu3 %v1711_v49 }
 0x207   :  { %884 = vmatpush.bf16.msrb.mxu3 %v2470_v18  ;;  %v1710_v18 = vld [vmem:[%s2934_s0 + $0x38] sm:$0xff] }
 0x208   :  { %1720 = vmatmul.msk.f32.vlgmr.msra.gmra.mxu2 %vm171_vm1, %v1710_v18 }
 0x20b   :  { %885 = vmatpush.bf16.msrb.mxu3 %v2476_v24 }
 0x20e   :  { %747 = vmatmul.f32.gmra.mxu3 %v1713_v21 }
 0x20f   :  { %955 = vmatpush.bf16.msra.mxu3 %v2511_v41 }
 0x210   :  { %1721 = vmatmul.msk.f32.gmra.mxu2 %vm171_vm1, %v1712_v25 }
 0x213   :  { %956 = vmatpush.bf16.msra.mxu3 %v2531_v51 }
 0x217   :  { %957 = vmatpush.bf16.msra.mxu3 %v2552_v62 }
 0x218   :  { %1722 = vmatmul.msk.f32.gmra.mxu2 %vm171_vm1, %v1714_v7 }
 0x21b   :  { %958 = vmatpush.bf16.msra.mxu3 %v2570_v46 }
 0x21f   :  { %959 = vmatpush.bf16.msra.mxu3 %v2588_v53 }
 0x267   :  { %v531_v45 = vpop.f32.mrf.mxu2 }
 0x26f   :  { %v485_v54 = vpop.f32.mrf.mxu0  ;;  %v533_v60 = vpop.f32.mrf.mxu2 }
 0x270   :  { %v532_v41 = vadd.f32 %v531_v45, %v485_v54 }
 0x271   :  { %v579_v63 = vpop.f32.mrf.mxu3 }
 0x272   :  { %v583_v51 = vadd.f32 %v579_v63, %v532_v41 }
 0x277   :  { %v487_v24 = vpop.f32.mrf.mxu0  ;;  %v677_v9 = vpop.f32.mrf.mxu2 }
 0x278   :  { %v2971_v24 = vld [vmem:[#allocation12_spill] sm:$0xff] }
 0x279   :  { %v581_v11 = vpop.f32.mrf.mxu3 }
 0x27f   :  { %v629_v14 = vpop.f32.mrf.mxu0  ;;  %v679_v20 = vpop.f32.mrf.mxu2 }
 0x280   :  { %v633_v62 = vadd.f32 %v629_v14, %v583_v51 }
 0x282   :  { %v681_v46 = vadd.f32 %v677_v9, %v633_v62 }
 0x284   :  { %v682_v30 = vadd.f32 %v2696_v27, %v681_v46 }
 0x286   :  { %v683_v61 = vmax.f32 %v682_v30, 0.0 }
 0x287   :  { %v631_v32 = vpop.f32.mrf.mxu0 }
 0x288   :  { %v684_v19 = vpack.c.bf16 %v683_v61, %v683_v61 }
 0x28a   :  { %v690_v34 = vsel %vm181_vm0, %v684_v19, 0 }
 0x28b   :  { %699 = vmatpush.bf16.msrb.mxu1 %v690_v34 }
 0x28e   :  { %1708 = vmatmul.msk.bf16.vlgmr.msrb.gmra.mxu1 %vm685_vm5, %v2709_v23 }
 0x28f   :  { %1715 = vmatpush.msk.msra.mxu1 %vm181_vm0, %v2248_v15 }
 0x291   :  { %766 = vmatpush.msra.mxu1 %v2253_v16 }
 0x293   :  { %777 = vmatpush.msrb.mxu1 %v2162_v0 }
 0x295   :  { %778 = vmatpush.msrb.mxu1 %v2167_v1  ;;  %v742_v1 = vpop.f32.mrf.mxu3 }
 0x296   :  { %v743_v16 = vadd.f32 %v742_v1, %v2407_v48 }
 0x297   :  { %779 = vmatpush.msrb.mxu1 %v2183_v4 }
 0x299   :  { %780 = vmatpush.msrb.mxu1 %v2195_v6 }
 0x29b   :  { %781 = vmatpush.msrb.mxu1 %v2207_v8 }
 0x29d   :  { %782 = vmatpush.msrb.mxu1 %v2219_v10  ;;  %v745_v8 = vpop.f32.mrf.mxu3 }
 0x29e   :  { %1716 = vmatmul.msk.f32.vlgmr.msra.gmra.mxu1 %vm171_vm1, %v1710_v18  ;;  %v746_v15 = vadd.f32 %v745_v8, %v2407_v48  ;;  %v2970_v18 = vld [vmem:[#allocation11_spill] sm:$0xff] }
 0x29f   :  { %783 = vmatpush.msrb.mxu1 %v2231_v12 }
 0x2a1   :  { %784 = vmatpush.msrb.mxu1 %v2237_v13 }
 0x2a3   :  { %785 = vmatpush.msrb.mxu1 %v2259_v17 }
 0x2a5   :  { %786 = vmatpush.msrb.mxu1 %v2291_v22  ;;  %v748_v12 = vpop.f32.mrf.mxu3 }
 0x2a6   :  { %1717 = vmatmul.msk.f32.gmra.mxu1 %vm171_vm1, %v1712_v25  ;;  %v749_v13 = vadd.f32 %v748_v12, %v2407_v48 }
 0x2a7   :  { %787 = vmatpush.msrb.mxu1 %v2312_v26 }
 0x2a9   :  { %788 = vmatpush.msrb.mxu1 %v2325_v28 }
 0x2ab   :  { %789 = vmatpush.msrb.mxu1 %v2340_v31 }
 0x2ad   :  { %790 = vmatpush.msrb.mxu1 %v2353_v33  ;;  %v820_v33 = vpop.f32.mrf.mxu2 }
 0x2ae   :  { %1718 = vmatmul.msk.f32.gmra.mxu1 %vm171_vm1, %v1714_v7 }
 0x2af   :  { %791 = vmatpush.msrb.mxu1 %v2365_v35 }
 0x2b1   :  { %792 = vmatpush.msrb.mxu1 %v2377_v37 }
 0x2b3   :  { %921 = vmatpush.bf16.msra.mxu1 %v2521_v43 }
 0x2b5   :  { %v823_v53 = vpop.f32.mrf.mxu2 }
 0x2b6   :  { %793 = vmatmul.f32.vlgmr.msrb.gmra.mxu1 %v1709_v52 }
 0x2b7   :  { %922 = vmatpush.bf16.msra.mxu1 %v2546_v44  ;;  %v2966_v44 = vld [vmem:[#allocation6_spill] sm:$0xff] }
 0x2bb   :  { %923 = vmatpush.bf16.msra.mxu1 %v2564_v40 }
 0x2be   :  { %796 = vmatmul.f32.gmra.mxu1 %v1711_v49  ;;  %v2968_v49 = vld [vmem:[#allocation9_spill] sm:$0xff] }
 0x2bf   :  { %924 = vmatpush.bf16.msra.mxu1 %v2582_v57 }
 0x2c3   :  { %925 = vmatpush.bf16.msra.mxu1 %v2603_v55 }
 0x2c6   :  { %799 = vmatmul.f32.gmra.mxu1 %v1713_v21 }
 0x2c7   :  { %993 = vmatpush.bf16.msrb.mxu1 %v2541_v59  ;;  %v2965_v59 = vld [vmem:[#allocation7_spill] sm:$0xff] }
 0x2cb   :  { %994 = vmatpush.bf16.msrb.mxu1 %v2559_v38 }
 0x2cf   :  { %995 = vmatpush.bf16.msrb.mxu1 %v2577_v47  ;;  %v826_v47 = vpop.f32.mrf.mxu2 }
 0x2d3   :  { %996 = vmatpush.bf16.msrb.mxu1 %v2598_v56 }
 0x2d7   :  { %997 = vmatpush.bf16.msrb.mxu1 %v2614_v50 }
 0x30b   :  { %v701_v0 = vpop.f32.mrf.mxu1 }
 0x30c   :  { %705 = vst [vmem:[#allocation2] sm:$0x1] %v701_v0 }
 0x30d   :  { %706 = vst [vmem:[#allocation2 + $0x1] sm:$0x2] %v701_v0 }
 0x30e   :  { %707 = vst [vmem:[#allocation2 + $0x2] sm:$0x4] %v701_v0 }
 0x30f   :  { %708 = vst [vmem:[#allocation2 + $0x3] sm:$0x8] %v701_v0 }
 0x313   :  { %v703_v4 = vpop.f32.mrf.mxu1 }
 0x31b   :  { %v768_v6 = vpop.f32.mrf.mxu1 }
 0x31c   :  { %v769_v31 = vadd.f32 %v768_v6, %v743_v16  ;;  %v2025_v16 = vld [vmem:[%s2942_s8 + $0xb8] sm:$0xff] }
 0x31e   :  { %v829_v55 = vmax.f32 %v769_v31, 0.0  ;;  %v2024_v31 = vld [vmem:[%s2942_s8 + $0xb0] sm:$0xff] }
 0x323   :  { %v771_v10 = vpop.f32.mrf.mxu1 }
 0x324   :  { %v772_v26 = vadd.f32 %v771_v10, %v746_v15  ;;  %v2009_v15 = vld [vmem:[%s2942_s8 + $0x38] sm:$0xff] }
 0x326   :  { %v831_v37 = vmax.f32 %v772_v26, 0.0 }
 0x328   :  { %v835_v43 = vpack.c.bf16 %v831_v37, %v829_v55  ;;  %v2015_v37 = vld [vmem:[%s2942_s8 + $0x68] sm:$0xff] }
 0x329   :  { %v2023_v55 = vld [vmem:[%s2942_s8 + $0xa8] sm:$0xff] }
 0x32b   :  { %v774_v17 = vpop.f32.mrf.mxu1 }
 0x32c   :  { %v775_v22 = vadd.f32 %v774_v17, %v749_v13  ;;  %v2017_v13 = vld [vmem:[%s2942_s8 + $0x78] sm:$0xff]  ;;  %v2016_v17 = vld [vmem:[%s2942_s8 + $0x70] sm:$0xff] }
 0x32e   :  { %v833_v28 = vmax.f32 %v775_v22, 0.0  ;;  %v2008_v22 = vld [vmem:[%s2942_s8 + $0x30] sm:$0xff] }
 0x330   :  { %v837_v35 = vpack.c.bf16 %v833_v28, %v833_v28 }
 0x332   :  { %v840_v50 = vsel %vm181_vm0, %v837_v35, 0 }
 0x333   :  { %v794_v56 = vpop.f32.mrf.mxu1  ;;  %851 = vmatpush.bf16.msrb.mxu0 %v840_v50  ;;  %v2007_v50 = vld [vmem:[%s2942_s8 + $0x28] sm:$0xff] }
 0x334   :  { %v795_v36 = vadd.f32 %v794_v56, %v2966_v44 }
 0x336   :  { %v821_v52 = vadd.f32 %v820_v33, %v795_v36  ;;  %v2021_v36 = vld [vmem:[%s2942_s8 + $0x98] sm:$0xff] }
 0x337   :  { %852 = vmatpush.bf16.msrb.mxu0 %v835_v43  ;;  %v2014_v43 = vld [vmem:[%s2942_s8 + $0x60] sm:$0xff] }
 0x338   :  { %v830_v60 = vmax.f32 %v821_v52, 0.0 }
 0x33a   :  { %1723 = vmatmul.msk.bf16.vlgmr.msrb.gmra.mxu0 %vm307_vm2, %v2965_v59 }
 0x33b   :  { %899 = vmatpush.bf16.msra.mxu0 %v2482_v29  ;;  %v797_v48 = vpop.f32.mrf.mxu1 }
 0x33c   :  { %v798_v38 = vadd.f32 %v797_v48, %v2966_v44  ;;  %v2022_v48 = vld [vmem:[%s2942_s8 + $0xa0] sm:$0xff] }
 0x33e   :  { %v824_v39 = vadd.f32 %v823_v53, %v798_v38  ;;  %v2006_v53 = vld [vmem:[%s2942_s8 + $0x20] sm:$0xff] }
 0x33f   :  { %975 = vmatpush.bf16.msrb.mxu0 %v2609_v42 }
 0x340   :  { %v832_v42 = vmax.f32 %v824_v39, 0.0 }
 0x342   :  { %v836_v63 = vpack.c.bf16 %v832_v42, %v830_v60 }
 0x343   :  { %976 = vmatpush.bf16.msrb.mxu0 %v2623_v2  ;;  %v800_v40 = vpop.f32.mrf.mxu1 }
 0x344   :  { %v801_v57 = vadd.f32 %v800_v40, %v2966_v44 }
 0x346   :  { %v827_v29 = vadd.f32 %v826_v47, %v801_v57  ;;  %v2013_v47 = vld [vmem:[%s2942_s8 + $0x58] sm:$0xff] }
 0x347   :  { %977 = vmatpush.bf16.msrb.mxu0 %v2630_v58  ;;  %v2967_v58 = vld [vmem:[#allocation8_spill] sm:$0xff] }
 0x348   :  { %v834_v45 = vmax.f32 %v827_v29, 0.0  ;;  %v2005_v57 = vld [vmem:[%s2942_s8 + $0x18] sm:$0xff] }
 0x34a   :  { %v838_v54 = vpack.c.bf16 %v834_v45, %v834_v45 }
 0x34b   :  { %978 = vmatpush.bf16.msrb.mxu0 %v2638_v3  ;;  %v2969_v3 = vld [vmem:[#allocation10_spill] sm:$0xff] }
 0x34c   :  { %v843_v2 = vsel %vm181_vm0, %v838_v54, 0 }
 0x34d   :  { %865 = vmatpush.bf16.msrb.mxu2 %v843_v2  ;;  %v2033_v2 = vld [vmem:[%s2942_s8 + $0xf8] sm:$0xff] }
 0x34f   :  { %979 = vmatpush.bf16.msrb.mxu0 %v2646_v5 }
 0x351   :  { %866 = vmatpush.bf16.msrb.mxu2 %v836_v63 }
 0x354   :  { %1724 = vmatmul.msk.bf16.vlgmr.msrb.gmra.mxu2 %vm307_vm2, %v2965_v59 }
 0x355   :  { %937 = vmatpush.bf16.msra.mxu2 %v2967_v58  ;;  %v2032_v58 = vld [vmem:[%s2942_s8 + $0xf0] sm:$0xff] }
 0x359   :  { %938 = vmatpush.bf16.msra.mxu2 %v2968_v49  ;;  %v2030_v49 = vld [vmem:[%s2942_s8 + $0xe0] sm:$0xff] }
 0x35d   :  { %939 = vmatpush.bf16.msra.mxu2 %v2969_v3  ;;  %v2029_v3 = vld [vmem:[%s2942_s8 + $0xd8] sm:$0xff] }
 0x361   :  { %940 = vmatpush.bf16.msra.mxu2 %v2970_v18  ;;  %v2004_v18 = vld [vmem:[%s2942_s8 + $0x10] sm:$0xff] }
 0x365   :  { %941 = vmatpush.bf16.msra.mxu2 %v2971_v24  ;;  %v2020_v24 = vld [vmem:[%s2942_s8 + $0x90] sm:$0xff] }
 0x3b7   :  { %v854_v5 = vpop.f32.mrf.mxu0 }
 0x3bf   :  { %v856_v9 = vpop.f32.mrf.mxu0 }
 0x3c0   :  { %v873_v11 = vpack.c.bf16 %v856_v9, %v854_v5  ;;  %v2028_v5 = vld [vmem:[%s2942_s8 + $0xd0] sm:$0xff]  ;;  %v2011_v9 = vld [vmem:[%s2942_s8 + $0x48] sm:$0xff] }
 0x3c2   :  { %886 = vmatmul.bf16.vlgmr.msrb.gmra.mxu3 %v873_v11  ;;  %v2003_v11 = vld [vmem:[%s2942_s8 + $0x8] sm:$0xff] }
 0x3c3   :  { %1112 = vmatpush.bf16.msrb.mxu3 %v2017_v13  ;;  %v2036_v13 = vld [vmem:[%s2944_s10 + $0x10] sm:$0xff] }
 0x3c7   :  { %1113 = vmatpush.bf16.msrb.mxu3 %v2016_v17  ;;  %v2049_v17 = vld [vmem:[%s2946_s12 + $0x38] sm:$0xff] }
 0x3cb   :  { %1114 = vmatpush.bf16.msrb.mxu3 %v2015_v37  ;;  %v2044_v37 = vld [vmem:[%s2946_s12 + $0x10] sm:$0xff] }
 0x3cf   :  { %1115 = vmatpush.bf16.msrb.mxu3 %v2014_v43 }
 0x3d3   :  { %1116 = vmatpush.bf16.msrb.mxu3 %v2013_v47 }
 0x3d7   :  { %v868_v41 = vpop.f32.mrf.mxu2 }
 0x3df   :  { %v870_v51 = vpop.f32.mrf.mxu2 }
 0x3e0   :  { %v874_v14 = vpack.c.bf16 %v870_v51, %v868_v41  ;;  %v2019_v41 = vld [vmem:[%s2942_s8 + $0x88] sm:$0xff] }
 0x3e1   :  { %v2027_v51 = vld [vmem:[%s2942_s8 + $0xc8] sm:$0xff] }
 0x3e2   :  { %1725 = vmatmul.msk.bf16.vlgmr.msra.gmra.mxu0 %vm401_vm3, %v874_v14  ;;  %v2010_v14 = vld [vmem:[%s2942_s8 + $0x40] sm:$0xff] }
 0x3e3   :  { %1173 = vmatpush.bf16.msra.mxu0 %v2009_v15  ;;  %v2035_v15 = vld [vmem:[%s2944_s10 + $0x8] sm:$0xff] }
 0x3e7   :  { %1174 = vmatpush.bf16.msra.mxu0 %v2008_v22  ;;  %v2048_v22 = vld [vmem:[%s2946_s12 + $0x30] sm:$0xff] }
 0x3eb   :  { %1175 = vmatpush.bf16.msra.mxu0 %v2007_v50 }
 0x3ef   :  { %1176 = vmatpush.bf16.msra.mxu0 %v2006_v53 }
 0x3f3   :  { %1177 = vmatpush.bf16.msra.mxu0 %v2005_v57 }
 0x3f7   :  { %1178 = vmatpush.bf16.msra.mxu0 %v2004_v18 }
 0x3fb   :  { %1179 = vmatpush.bf16.msra.mxu0 %v2003_v11 }
 0x445   :  { %v887_v20 = vpop.f32.mrf.mxu3 }
 0x44d   :  { %v889_v46 = vpop.f32.mrf.mxu3 }
 0x45f   :  { %v901_v21 = vpop.f32.mrf.mxu0 }
 0x460   :  { %v902_v25 = vadd.f32 %v901_v21, %v887_v20  ;;  %v2002_v20 = vld [vmem:[%s2942_s8] sm:$0xff] }
 0x461   :  { %v2018_v21 = vld [vmem:[%s2942_s8 + $0x80] sm:$0xff]  ;;  %1180 = vmatpush.bf16.msra.mxu0 %v2002_v20 }
 0x462   :  { %v906_v62 = vpack.c.bf16 %v902_v25, %v902_v25 }
 0x464   :  { %1727 = vmatmul.msk.bf16.vlgmr.msra.gmra.mxu2 %vm469_vm4, %v906_v62  ;;  %v2041_v62 = vld [vmem:[%s2944_s10 + $0x38] sm:$0xff] }
 0x467   :  { %v903_v30 = vpop.f32.mrf.mxu0 }
 0x468   :  { %v904_v61 = vadd.f32 %v903_v30, %v889_v46  ;;  %v2040_v46 = vld [vmem:[%s2944_s10 + $0x30] sm:$0xff]  ;;  %v2039_v30 = vld [vmem:[%s2944_s10 + $0x28] sm:$0xff] }
 0x46a   :  { %v907_v32 = vpack.c.bf16 %v904_v61, %v902_v25  ;;  %v2026_v25 = vld [vmem:[%s2942_s8 + $0xc0] sm:$0xff] }
 0x46c   :  { %v909_v7 = vshrl.u32 %v907_v32, 16  ;;  %v911_v19 = vshll.u32 %v907_v32, 16  ;;  %v948_v34 = vrot.slane %v907_v32, 1  ;;  %v986_v10 = vrot.slane %v907_v32, 2 }
 0x46e   :  { %v913_v0 = vrot.slane %v911_v19, 1  ;;  %v966_v1 = vrot.slane %v909_v7, 1  ;;  %v967_v4 = vrot.slane %v911_v19, 2  ;;  %1728 = vmatmul.msk.bf16.vlgmr.msra.gmra.mxu3 %vm469_vm4, %v948_v34 }
 0x470   :  { %v914_v6 = vor.u32 %v913_v0, %v909_v7  ;;  %v968_v8 = vor.u32 %v967_v4, %v966_v1 }
 0x472   :  { %1726 = vmatmul.msk.bf16.vlgmr.msra.gmra.mxu1 %vm469_vm4, %v914_v6  ;;  %1729 = vmatmul.msk.bf16.vlgmr.msrb.gmra.mxu0 %vm469_vm4, %v968_v8 }
 0x473   :  { %1253 = vmatpush.bf16.msra.mxu1 %v2025_v16  ;;  %v2034_v16 = vld [vmem:[%s2944_s10] sm:$0xff]  ;;  %1506 = vmatpush.bf16.msrb.mxu0 %v2049_v17 }
 0x477   :  { %1254 = vmatpush.bf16.msra.mxu1 %v2024_v31  ;;  %1507 = vmatpush.bf16.msrb.mxu0 %v2048_v22 }
 0x47b   :  { %1255 = vmatpush.bf16.msra.mxu1 %v2023_v55 }
 0x47f   :  { %1256 = vmatpush.bf16.msra.mxu1 %v2022_v48 }
 0x482   :  { %1730 = vmatmul.msk.bf16.vlgmr.msrb.gmra.mxu1 %vm469_vm4, %v986_v10  ;;  %v2038_v10 = vld [vmem:[%s2944_s10 + $0x20] sm:$0xff] }
 0x483   :  { %1257 = vmatpush.bf16.msra.mxu1 %v2021_v36 }
 0x487   :  { %1258 = vmatpush.bf16.msra.mxu1 %v2020_v24 }
 0x48b   :  { %1259 = vmatpush.bf16.msra.mxu1 %v2019_v41 }
 0x48f   :  { %1260 = vmatpush.bf16.msra.mxu1 %v2018_v21 }
 0x4e7   :  { %v943_v12 = vpop.f32.mrf.mxu2 }
 0x4ef   :  { %v927_v26 = vpop.f32.mrf.mxu1  ;;  %v945_v28 = vpop.f32.mrf.mxu2 }
 0x4f0   :  { %v981_v33 = vpop.f32.mrf.mxu0  ;;  %v944_v56 = vadd.f32 %v943_v12, %v927_v26  ;;  %v2037_v12 = vld [vmem:[%s2944_s10 + $0x18] sm:$0xff]  ;;  %v2047_v26 = vld [vmem:[%s2946_s12 + $0x28] sm:$0xff]  ;;  %v2046_v28 = vld [vmem:[%s2946_s12 + $0x20] sm:$0xff] }
 0x4f1   :  { %v961_v35 = vpop.f32.mrf.mxu3  ;;  %1508 = vmatpush.bf16.msrb.mxu0 %v2047_v26 }
 0x4f2   :  { %v965_v40 = vadd.f32 %v961_v35, %v944_v56  ;;  %v2045_v35 = vld [vmem:[%s2946_s12 + $0x18] sm:$0xff] }
 0x4f4   :  { %v985_v29 = vadd.f32 %v981_v33, %v965_v40 }
 0x4f5   :  { %1509 = vmatpush.bf16.msrb.mxu0 %v2046_v28 }
 0x4f7   :  { %v929_v59 = vpop.f32.mrf.mxu1 }
 0x4f8   :  { %v983_v44 = vpop.f32.mrf.mxu0  ;;  %v2054_v59 = vld [vmem:[%s2943_s9] ss:$0 sm:$0xff] }
 0x4f9   :  { %v963_v38 = vpop.f32.mrf.mxu3  ;;  %1510 = vmatpush.bf16.msrb.mxu0 %v2045_v35 }
 0x4fd   :  { %1511 = vmatpush.bf16.msrb.mxu0 %v2044_v37 }
 0x4ff   :  { %v999_v39 = vpop.f32.mrf.mxu1 }
 0x500   :  { %v1003_v45 = vadd.f32 %v999_v39, %v985_v29  ;;  %v2043_v29 = vld [vmem:[%s2946_s12 + $0x8] sm:$0xff]  ;;  %v2042_v39 = vld [vmem:[%s2946_s12] sm:$0xff]  ;;  %s1527_s12 = sshll.u32 %s2948_s14, 4  ;;  %s1528_s12 = int_to_ptr.hbm [resolvable:$true] %s1527_s12 }
 0x501   :  { %1512 = vmatpush.bf16.msrb.mxu0 %v2043_v29 }
 0x502   :  { %v1004_v52 = vadd.f32 %v2696_v27, %v1003_v45  ;;  %v2031_v27 = vld [vmem:[%s2942_s8 + $0xe8] sm:$0xff]  ;;  %v2055_v45 = vld [vmem:[%s2945_s11] ss:$0 sm:$0xff] }
 0x504   :  { %v1005_v54 = vmax.f32 %v1004_v52, 0.0 }
 0x505   :  { %1513 = vmatpush.bf16.msrb.mxu0 %v2042_v39 }
 0x506   :  { %v1006_v42 = vpack.c.bf16 %v1005_v54, %v1005_v54 }
 0x507   :  { %v1001_v60 = vpop.f32.mrf.mxu1 }
 0x508   :  { %v1008_v63 = vsel %vm181_vm0, %v1006_v42, 0 }
 0x509   :  { %1017 = vmatpush.bf16.msrb.mxu2 %v1008_v63  ;;  %v2056_v63 = vld [vmem:[%s2947_s13] ss:$0 sm:$0xff] }
 0x50c   :  { %1731 = vmatmul.msk.bf16.vlgmr.msrb.gmra.mxu2 %vm685_vm5, %v2709_v23  ;;  %v2012_v23 = vld [vmem:[%s2942_s8 + $0x50] sm:$0xff] }
 0x50d   :  { %1334 = vmatpush.bf16.msra.mxu2 %v2033_v2  ;;  %1117 = vmatpush.bf16.msrb.mxu3 %v2012_v23 }
 0x511   :  { %1335 = vmatpush.bf16.msra.mxu2 %v2032_v58  ;;  %1118 = vmatpush.bf16.msrb.mxu3 %v2011_v9 }
 0x515   :  { %1336 = vmatpush.bf16.msra.mxu2 %v2031_v27  ;;  %1119 = vmatpush.bf16.msrb.mxu3 %v2010_v14 }
 0x519   :  { %1337 = vmatpush.bf16.msra.mxu2 %v2030_v49  ;;  %1423 = vmatpush.bf16.msra.mxu3 %v2041_v62 }
 0x51d   :  { %1338 = vmatpush.bf16.msra.mxu2 %v2029_v3  ;;  %1424 = vmatpush.bf16.msra.mxu3 %v2040_v46 }
 0x521   :  { %1339 = vmatpush.bf16.msra.mxu2 %v2028_v5  ;;  %1425 = vmatpush.bf16.msra.mxu3 %v2039_v30 }
 0x525   :  { %1340 = vmatpush.bf16.msra.mxu2 %v2027_v51  ;;  %1426 = vmatpush.bf16.msra.mxu3 %v2038_v10 }
 0x529   :  { %1341 = vmatpush.bf16.msra.mxu2 %v2026_v25  ;;  %1427 = vmatpush.bf16.msra.mxu3 %v2037_v12 }
 0x52d   :  { %1428 = vmatpush.bf16.msra.mxu3 %v2036_v13 }
 0x531   :  { %1429 = vmatpush.bf16.msra.mxu3 %v2035_v15 }
 0x535   :  { %1430 = vmatpush.bf16.msra.mxu3 %v2034_v16 }
 0x58f   :  { %v1019_v61 = vpop.f32.mrf.mxu2 }
 0x590   :  { %1023 = vst [vmem:[#allocation2 + $0x1] sm:$0x1] %v1019_v61 }
 0x591   :  { %1024 = vst [vmem:[#allocation2 + $0x2] sm:$0x2] %v1019_v61 }
 0x592   :  { %1025 = vst [vmem:[#allocation2 + $0x3] sm:$0x4] %v1019_v61 }
 0x593   :  { %1026 = vst [vmem:[#allocation2 + $0x4] sm:$0x8] %v1019_v61 }
 0x597   :  { %v1027_v32 = vld [vmem:[#allocation2] sm:$0x3]  ;;  %v1021_v7 = vpop.f32.mrf.mxu2 }
 0x598   :  { %v1045_v19 = vld [vmem:[#allocation2 + $0x2] sm:$0x3]  ;;  %v1028_v34 = vpack.c.bf16 %v1027_v32, %v1027_v32 }
 0x599   :  { %v1046_v0 = vpack.c.bf16 %v1045_v19, %v1045_v19  ;;  %v1186_v1 = vld [vmem:[#allocation2 + $0x4] sm:$0x3] }
 0x59a   :  { %1181 = vmatmul.bf16.vlgmr.msra.gmra.mxu0 %v1028_v34  ;;  %v1187_v4 = vpack.c.bf16 %v1186_v1, %v1186_v1  ;;  %v1267_v6 = vld [vmem:[#allocation2 + $0x6] sm:$0x3] }
 0x59b   :  { %1120 = vmatmul.bf16.vlgmr.msrb.gmra.mxu3 %v1046_v0  ;;  %v1268_v8 = vpack.c.bf16 %v1267_v6, %v1267_v6 }
 0x59c   :  { %1261 = vmatmul.bf16.vlgmr.msra.gmra.mxu1 %v1187_v4 }
 0x59d   :  { %1342 = vmatmul.bf16.vlgmr.msra.gmra.mxu2 %v1268_v8 }
 0x617   :  { %v1182_v31 = vpop.f32.mrf.mxu0 }
 0x619   :  { %v1262_v33 = vpop.f32.mrf.mxu1 }
 0x61e   :  { %v1121_v50 = vpop.f32.mrf.mxu3 }
 0x61f   :  { %v1183_v55 = vadd.f32 %v1182_v31, %v1121_v50  ;;  %v1184_v56 = vpop.f32.mrf.mxu0 }
 0x620   :  { %v1343_v43 = vpop.f32.mrf.mxu2 }
 0x621   :  { %v1266_v53 = vadd.f32 %v1262_v33, %v1183_v55  ;;  %v1264_v48 = vpop.f32.mrf.mxu1 }
 0x623   :  { %v1347_v44 = vadd.f32 %v1343_v43, %v1266_v53 }
 0x625   :  { %v1352_v38 = vadd.f32 %v2054_v59, %v1347_v44 }
 0x626   :  { %v1123_v40 = vpop.f32.mrf.mxu3 }
 0x627   :  { %v1353_v47 = vmax.f32 %v1352_v38, 0.0 }
 0x628   :  { %v1345_v57 = vpop.f32.mrf.mxu2 }
 0x629   :  { %v1354_v36 = vpack.c.bf16 %v1353_v47, %v1353_v47 }
 0x62b   :  { %1431 = vmatmul.bf16.vlgmr.msra.gmra.mxu3 %v1354_v36 }
 0x6ae   :  { %v1432_v52 = vpop.f32.mrf.mxu3 }
 0x6af   :  { %v1433_v54 = vadd.f32 %v2055_v45, %v1432_v52 }
 0x6b1   :  { %v1436_v42 = vmax.f32 %v1433_v54, 0.0 }
 0x6b3   :  { %v1437_v2 = vpack.c.bf16 %v1436_v42, %v1436_v42 }
 0x6b5   :  { %1514 = vmatmul.bf16.vlgmr.msrb.gmra.mxu0 %v1437_v2 }
 0x6b6   :  { %v1434_v60 = vpop.f32.mrf.mxu3 }
 0x732   :  { %v1515_v58 = vpop.f32.mrf.mxu0 }
 0x733   :  { %v1516_v27 = vadd.f32 %v2056_v63, %v1515_v58 }
 0x735   :  { %1519 = vst [vmem:[#allocation3] sm:$0x3] %v1516_v27 }
 0x736   :  { %1530 = dma.vmem_to_hbm [thread:$0]  %s1526_s24, 32, %s1528_s12, [#allocation4]  }
 0x73a   :  { %v1517_v49 = vpop.f32.mrf.mxu0 }
 0x73b   :  { %2081 = dma.done.wait [#allocation4], 32  }
 0x73c   :  { %2082 = vsyncadd [#allocation4], 4294967264 }
 0x73d   :  { %1535 = vsyncpa [#allocation4], 1 }

</bundles_post_ra>
